<compile_context>
chip_gen: v7x
topology: tpu7x:2x2x1
jax: 0.10.0
libtpu: 0.0.40
codegen_flags: <defaults>
</compile_context>

<pallas_src>
import functools

import jax
import jax.numpy as jnp
import numpy as np
from jax import lax
from jax.experimental import pallas as pl
from jax.experimental.pallas import tpu as pltpu


def _layer_norm(x, gamma, beta, eps=1e-5):
    mean = jnp.mean(x, axis=-1, keepdims=True)
    var = jnp.mean((x - mean) ** 2, axis=-1, keepdims=True)
    return (x - mean) * lax.rsqrt(var + eps) * gamma + beta


def encoder_block_kernel(num_heads,
                         # inputs
                         x_ref, q_ref, k_ref, v_ref, bias_ref,
                         wo_ref, bo_ref, g1_ref, be1_ref,
                         w1_ref, b1_ref, w2_ref, b2_ref, w3_ref, b3_ref,
                         g2_ref, be2_ref,
                         # outputs
                         out_ref,
                         # scratch
                         m_sc, l_sc, acc_sc):
    """One grid step = (batch b, query tile qi, key tile ki)."""
    ki = pl.program_id(2)
    nk = pl.num_programs(2)
    H = num_heads

    # ---- first key tile: reset online-softmax state ----
    @pl.when(ki == 0)
    def _init():
        m_sc[...] = jnp.full(m_sc.shape, -jnp.inf, jnp.float32)
        l_sc[...] = jnp.zeros(l_sc.shape, jnp.float32)
        acc_sc[...] = jnp.zeros(acc_sc.shape, jnp.float32)

    # ---- hot loop: head-batched flash-attention step (bf16 MXU, f32 accumulation) ----
    q = q_ref[0]          # (H, TQ, dh) bf16, pre-scaled by 1/sqrt(dh)
    k = k_ref[0]          # (H, TK, dh) bf16
    v = v_ref[0]          # (H, TK, dh) bf16
    bias = bias_ref[0]    # (1, TK)  f32 additive key-padding bias (0 or -1e9)

    s = jnp.einsum("hqd,hkd->hqk", q, k,
                   preferred_element_type=jnp.float32) + bias         # (H, TQ, TK)
    m_prev = m_sc[...]                                                 # (H, TQ, 1)
    m_new = jnp.maximum(m_prev, jnp.max(s, axis=-1, keepdims=True))
    alpha = jnp.exp(m_prev - m_new)
    p = jnp.exp(s - m_new)
    l_sc[...] = alpha * l_sc[...] + jnp.sum(p, axis=-1, keepdims=True)
    acc_sc[...] = alpha * acc_sc[...] + jnp.einsum(
        "hqk,hkd->hqd", p.astype(v.dtype), v, preferred_element_type=jnp.float32)
    m_sc[...] = m_new

    # ---- last key tile: out-projection, residual + LN1, FFN, residual + LN2 ----
    @pl.when(ki == nk - 1)
    def _finalize():
        xq = x_ref[0].astype(jnp.float32)        # (TQ, D) — only loaded on the last step
        TQ, D = xq.shape
        proj = jnp.zeros((TQ, D), jnp.float32)
        for h in range(H):                       # runs once per q tile; cheap
            inv_l = pl.reciprocal(l_sc[h], approx=True)          # EUP slot, not VALU
            ctx = (acc_sc[h] * inv_l).astype(jnp.bfloat16)       # (TQ, dh)
            # Fold W_o per head — no concatenate of head outputs.
            proj = proj + jnp.dot(ctx, wo_ref[h], preferred_element_type=jnp.float32)
        attn = proj + bo_ref[...]

        # dropout = identity (eval mode)
        x1 = _layer_norm(xq + attn, g1_ref[...], be1_ref[...])

        h1 = jnp.maximum(jnp.dot(x1.astype(jnp.bfloat16), w1_ref[...],
                                 preferred_element_type=jnp.float32) + b1_ref[...], 0.0)
        h2 = jnp.maximum(jnp.dot(h1.astype(jnp.bfloat16), w2_ref[...],
                                 preferred_element_type=jnp.float32) + b2_ref[...], 0.0)
        ff = jnp.dot(h2.astype(jnp.bfloat16), w3_ref[...],
                     preferred_element_type=jnp.float32) + b3_ref[...]

        x2 = _layer_norm(x1 + ff, g2_ref[...], be2_ref[...])
        out_ref[0] = x2.astype(out_ref.dtype)


def encoder_block(x, key_valid, params, num_heads, *, tq=None, tk=None,
                  vmem_limit_bytes=32 * 1024 * 1024):
    """x: (B,S,D).  key_valid: (B,S) — 1.0 for attendable keys, 0.0 for masked keys."""
    B, S, D = x.shape
    H = num_heads
    assert D % H == 0
    dh = D // H
    HID = params["w1"].shape[1]
    FF = params["w2"].shape[1]

    # Default tiles: 256 fills the 256-wide MXU on v6e/v7x and amortizes per-step
    # overhead; still 128-aligned for v5e.
    tq = tq if tq is not None else min(S, 256)
    tk = tk if tk is not None else min(S, 256)
    assert S % tq == 0 and S % tk == 0, "S must be divisible by the q/k tile sizes"
    nq, nk = S // tq, S // tk
    scale = 1.0 / float(np.sqrt(dh))

    bf = jnp.bfloat16
    x_bf = x.astype(bf)

    # ---- hoisted Q/K/V projections (bf16 operands, f32 accumulation), head-major ----
    def head_proj(w, b, s=1.0):
        wh = w.reshape(D, H, dh).astype(bf)
        y = jnp.einsum("bsd,dhe->bhse", x_bf, wh, preferred_element_type=jnp.float32)
        y = (y + b.reshape(1, H, 1, dh)) * s
        return y.astype(bf)                       # (B, H, S, dh)

    q = head_proj(params["wq"], params["bq"], scale)   # softmax scale folded into q
    k = head_proj(params["wk"], params["bk"])
    v = head_proj(params["wv"], params["bv"])

    # Additive key-padding bias precomputed once: 0 for valid keys, -1e9 for padded.
    bias = ((key_valid.astype(jnp.float32) - 1.0) * 1e9).reshape(B, 1, S)

    wo_h = params["wo"].reshape(H, dh, D).astype(bf)
    w1 = params["w1"].astype(bf)
    w2 = params["w2"].astype(bf)
    w3 = params["w3"].astype(bf)

    def _const(shape):                             # weights: constant block index
        zeros = (0,) * len(shape)
        return pl.BlockSpec(shape, lambda b, qi, ki, z=zeros: z)

    in_specs = [
        pl.BlockSpec((1, tq, D), lambda b, qi, ki: (b, qi, 0)),        # x (residual rows)
        pl.BlockSpec((1, H, tq, dh), lambda b, qi, ki: (b, 0, qi, 0)),  # q (head-major)
        pl.BlockSpec((1, H, tk, dh), lambda b, qi, ki: (b, 0, ki, 0)),  # k
        pl.BlockSpec((1, H, tk, dh), lambda b, qi, ki: (b, 0, ki, 0)),  # v
        pl.BlockSpec((1, 1, tk), lambda b, qi, ki: (b, 0, ki)),         # key-padding bias
        _const((H, dh, D)), _const((1, D)),       # wo (head-major), bo
        _const((1, D)), _const((1, D)),           # ln1 gamma, beta
        _const((D, HID)), _const((1, HID)),       # ffn w1, b1
        _const((HID, FF)), _const((1, FF)),       # ffn w2, b2
        _const((FF, D)), _const((1, D)),          # ffn w3, b3
        _const((1, D)), _const((1, D)),           # ln2 gamma, beta
    ]

    kernel = functools.partial(encoder_block_kernel, H)

    return pl.pallas_call(
        kernel,
        out_shape=jax.ShapeDtypeStruct((B, S, D), x.dtype),
        grid=(B, nq, nk),
        in_specs=in_specs,
        out_specs=pl.BlockSpec((1, tq, D), lambda b, qi, ki: (b, qi, 0)),
        scratch_shapes=[
            pltpu.VMEM((H, tq, 1), jnp.float32),    # online-softmax running max
            pltpu.VMEM((H, tq, 1), jnp.float32),    # online-softmax running denom
            pltpu.VMEM((H, tq, dh), jnp.float32),   # per-head running context
        ],
        compiler_params=pltpu.CompilerParams(
            dimension_semantics=("parallel", "parallel", "arbitrary"),
            vmem_limit_bytes=vmem_limit_bytes),
    )(x, q, k, v, bias,
      wo_h, params["bo"], params["g1"], params["be1"],
      w1, params["b1"], w2, params["b2"], w3, params["b3"],
      params["g2"], params["be2"])


def encoder_block_ref(x, key_valid, params, num_heads):
    """Pure-JAX f32 reference with identical semantics, for validation."""
    B, S, D = x.shape
    dh = D // num_heads
    scale = 1.0 / np.sqrt(dh)

    def ln(y, g, b, eps=1e-5):
        m = jnp.mean(y, -1, keepdims=True)
        v = jnp.mean((y - m) ** 2, -1, keepdims=True)
        return (y - m) / jnp.sqrt(v + eps) * g + b

    q = x @ params["wq"] + params["bq"]
    k = x @ params["wk"] + params["bk"]
    v = x @ params["wv"] + params["bv"]
    q = q.reshape(B, S, num_heads, dh).transpose(0, 2, 1, 3)
    k = k.reshape(B, S, num_heads, dh).transpose(0, 2, 1, 3)
    v = v.reshape(B, S, num_heads, dh).transpose(0, 2, 1, 3)
    scores = jnp.einsum("bhqd,bhkd->bhqk", q, k) * scale
    scores = scores + jnp.where(key_valid[:, None, None, :] == 0, -1e9, 0.0)
    p = jax.nn.softmax(scores, axis=-1)
    attn = jnp.einsum("bhqk,bhkd->bhqd", p, v).transpose(0, 2, 1, 3).reshape(B, S, D)
    attn = attn @ params["wo"] + params["bo"]
    x1 = ln(x + attn, params["g1"], params["be1"])
    h1 = jax.nn.relu(x1 @ params["w1"] + params["b1"])
    h2 = jax.nn.relu(h1 @ params["w2"] + params["b2"])
    ff = h2 @ params["w3"] + params["b3"]
    return ln(x1 + ff, params["g2"], params["be2"])


if __name__ == "__main__":
    # D / HIDDEN / FF are multiples of 128 so all kernel stores are lane-dense.
    B, S, D = 2, 8, 128
    NUM_HEADS = 4
    HIDDEN = 128     # hidden_dimensionality
    FF = 256         # feedforward_dimensionality

    key = jax.random.PRNGKey(0)
    ks = jax.random.split(key, 16)

    def lin(k_, fan_in, fan_out):
        return jax.random.normal(k_, (fan_in, fan_out), jnp.float32) / np.sqrt(fan_in)

    params = {
        "wq": lin(ks[0], D, D), "bq": jnp.zeros((1, D), jnp.float32),
        "wk": lin(ks[1], D, D), "bk": jnp.zeros((1, D), jnp.float32),
        "wv": lin(ks[2], D, D), "bv": jnp.zeros((1, D), jnp.float32),
        "wo": lin(ks[3], D, D), "bo": jnp.zeros((1, D), jnp.float32),
        "g1": jnp.ones((1, D), jnp.float32), "be1": jnp.zeros((1, D), jnp.float32),
        "w1": lin(ks[4], D, HIDDEN), "b1": 0.01 * jnp.ones((1, HIDDEN), jnp.float32),
        "w2": lin(ks[5], HIDDEN, FF), "b2": 0.01 * jnp.ones((1, FF), jnp.float32),
        "w3": lin(ks[6], FF, D), "b3": jnp.zeros((1, D), jnp.float32),
        "g2": jnp.ones((1, D), jnp.float32), "be2": jnp.zeros((1, D), jnp.float32),
    }

    x = jax.random.normal(ks[7], (B, S, D), jnp.float32)

    # key-padding mask: batch 0 attends to all 8 keys, batch 1 only to the first 6.
    lengths = jnp.array([8, 6], dtype=jnp.int32)
    key_valid = (jnp.arange(S)[None, :] < lengths[:, None]).astype(jnp.float32)  # (B, S)

    out = encoder_block(x, key_valid, params, NUM_HEADS)
    out = jax.block_until_ready(out)

    # Tolerance reflects bf16 matmul operands (f32 accumulation) vs an all-f32 reference.
    ref = encoder_block_ref(x, key_valid, params, NUM_HEADS)
    np.testing.assert_allclose(np.asarray(out), np.asarray(ref), atol=6e-2, rtol=6e-2)

    print("KERNEL_OK")
</pallas_src>

<mosaic_0001>
module attributes {stable_mosaic.version = 11 : i64} {
  func.func @encoder_block_kernel(%arg0: i32, %arg1: i32, %arg2: i32, %arg3: memref<1x8x128xf32, #tpu.memory_space<vmem>>, %arg4: memref<1x4x8x32xbf16, #tpu.memory_space<vmem>>, %arg5: memref<1x4x8x32xbf16, #tpu.memory_space<vmem>>, %arg6: memref<1x4x8x32xbf16, #tpu.memory_space<vmem>>, %arg7: memref<1x1x8xf32, #tpu.memory_space<vmem>>, %arg8: memref<4x32x128xbf16, #tpu.memory_space<vmem>>, %arg9: memref<1x128xf32, #tpu.memory_space<vmem>>, %arg10: memref<1x128xf32, #tpu.memory_space<vmem>>, %arg11: memref<1x128xf32, #tpu.memory_space<vmem>>, %arg12: memref<128x128xbf16, #tpu.memory_space<vmem>>, %arg13: memref<1x128xf32, #tpu.memory_space<vmem>>, %arg14: memref<128x256xbf16, #tpu.memory_space<vmem>>, %arg15: memref<1x256xf32, #tpu.memory_space<vmem>>, %arg16: memref<256x128xbf16, #tpu.memory_space<vmem>>, %arg17: memref<1x128xf32, #tpu.memory_space<vmem>>, %arg18: memref<1x128xf32, #tpu.memory_space<vmem>>, %arg19: memref<1x128xf32, #tpu.memory_space<vmem>>, %arg20: memref<1x8x128xf32, #tpu.memory_space<vmem>>, %arg21: memref<4x8x1xf32, #tpu.memory_space<vmem>>, %arg22: memref<4x8x1xf32, #tpu.memory_space<vmem>>, %arg23: memref<4x8x32xf32, #tpu.memory_space<vmem>>) attributes {dimension_semantics = [#tpu.dimension_semantics<parallel>, #tpu.dimension_semantics<parallel>, #tpu.dimension_semantics<arbitrary>], iteration_bounds = array<i64: 2, 1, 1>, scalar_prefetch = 0 : i64, scratch_operands = 3 : i64, tpu.core_type = #tpu.core_type<tc>, window_params = [{transform_indices = @transform_0, window_bounds = array<i64: 1, 8, 128>}, {transform_indices = @transform_1, window_bounds = array<i64: 1, 4, 8, 32>}, {transform_indices = @transform_2, window_bounds = array<i64: 1, 4, 8, 32>}, {transform_indices = @transform_3, window_bounds = array<i64: 1, 4, 8, 32>}, {transform_indices = @transform_4, window_bounds = array<i64: 1, 1, 8>}, {pipeline_mode = #tpu.pipeline_mode<synchronous>, transform_indices = @transform_5, window_bounds = array<i64: 4, 32, 128>}, {pipeline_mode = #tpu.pipeline_mode<synchronous>, transform_indices = @transform_6, window_bounds = array<i64: 1, 128>}, {pipeline_mode = #tpu.pipeline_mode<synchronous>, transform_indices = @transform_7, window_bounds = array<i64: 1, 128>}, {pipeline_mode = #tpu.pipeline_mode<synchronous>, transform_indices = @transform_8, window_bounds = array<i64: 1, 128>}, {pipeline_mode = #tpu.pipeline_mode<synchronous>, transform_indices = @transform_9, window_bounds = array<i64: 128, 128>}, {pipeline_mode = #tpu.pipeline_mode<synchronous>, transform_indices = @transform_10, window_bounds = array<i64: 1, 128>}, {pipeline_mode = #tpu.pipeline_mode<synchronous>, transform_indices = @transform_11, window_bounds = array<i64: 128, 256>}, {pipeline_mode = #tpu.pipeline_mode<synchronous>, transform_indices = @transform_12, window_bounds = array<i64: 1, 256>}, {pipeline_mode = #tpu.pipeline_mode<synchronous>, transform_indices = @transform_13, window_bounds = array<i64: 256, 128>}, {pipeline_mode = #tpu.pipeline_mode<synchronous>, transform_indices = @transform_14, window_bounds = array<i64: 1, 128>}, {pipeline_mode = #tpu.pipeline_mode<synchronous>, transform_indices = @transform_15, window_bounds = array<i64: 1, 128>}, {pipeline_mode = #tpu.pipeline_mode<synchronous>, transform_indices = @transform_16, window_bounds = array<i64: 1, 128>}, {transform_indices = @transform_17, window_bounds = array<i64: 1, 8, 128>}]} {
    %c0_i32 = arith.constant 0 : i32
    %0 = arith.cmpi eq, %arg2, %c0_i32 : i32
    %1 = arith.extui %0 : i1 to i32
    %c0_i32_0 = arith.constant 0 : i32
    %2 = arith.cmpi ne, %1, %c0_i32_0 : i32
    scf.if %2 {
      %cst_38 = arith.constant 0xFF800000 : f32
      %41 = vector.broadcast %cst_38 : f32 to vector<4x8x1xf32>
      %c0_39 = arith.constant 0 : index
      %c0_40 = arith.constant 0 : index
      %c0_41 = arith.constant 0 : index
      %42 = vector.load %arg21[%c0_39, %c0_40, %c0_41] : memref<4x8x1xf32, #tpu.memory_space<vmem>>, vector<4x8x1xf32>
      tpu.vector_store %arg21[%c0_39, %c0_40, %c0_41], %41 {strides = array<i32>} : memref<4x8x1xf32, #tpu.memory_space<vmem>>, vector<4x8x1xf32>,
      %cst_42 = arith.constant 0.000000e+00 : f32
      %43 = vector.broadcast %cst_42 : f32 to vector<4x8x1xf32>
      %c0_43 = arith.constant 0 : index
      %c0_44 = arith.constant 0 : index
      %c0_45 = arith.constant 0 : index
      %44 = vector.load %arg22[%c0_43, %c0_44, %c0_45] : memref<4x8x1xf32, #tpu.memory_space<vmem>>, vector<4x8x1xf32>
      tpu.vector_store %arg22[%c0_43, %c0_44, %c0_45], %43 {strides = array<i32>} : memref<4x8x1xf32, #tpu.memory_space<vmem>>, vector<4x8x1xf32>,
      %cst_46 = arith.constant 0.000000e+00 : f32
      %45 = vector.broadcast %cst_46 : f32 to vector<4x8x32xf32>
      %c0_47 = arith.constant 0 : index
      %c0_48 = arith.constant 0 : index
      %c0_49 = arith.constant 0 : index
      %46 = vector.load %arg23[%c0_47, %c0_48, %c0_49] : memref<4x8x32xf32, #tpu.memory_space<vmem>>, vector<4x8x32xf32>
      tpu.vector_store %arg23[%c0_47, %c0_48, %c0_49], %45 {strides = array<i32>} : memref<4x8x32xf32, #tpu.memory_space<vmem>>, vector<4x8x32xf32>,
    } else {
    }
    %c0 = arith.constant 0 : index
    %c0_1 = arith.constant 0 : index
    %c0_2 = arith.constant 0 : index
    %c0_3 = arith.constant 0 : index
    %3 = vector.load %arg4[%c0, %c0_1, %c0_2, %c0_3] : memref<1x4x8x32xbf16, #tpu.memory_space<vmem>>, vector<1x4x8x32xbf16>
    %4 = vector.shape_cast %3 : vector<1x4x8x32xbf16> to vector<4x8x32xbf16>
    %c0_4 = arith.constant 0 : index
    %c0_5 = arith.constant 0 : index
    %c0_6 = arith.constant 0 : index
    %c0_7 = arith.constant 0 : index
    %5 = vector.load %arg5[%c0_4, %c0_5, %c0_6, %c0_7] : memref<1x4x8x32xbf16, #tpu.memory_space<vmem>>, vector<1x4x8x32xbf16>
    %6 = vector.shape_cast %5 : vector<1x4x8x32xbf16> to vector<4x8x32xbf16>
    %c0_8 = arith.constant 0 : index
    %c0_9 = arith.constant 0 : index
    %c0_10 = arith.constant 0 : index
    %c0_11 = arith.constant 0 : index
    %7 = vector.load %arg6[%c0_8, %c0_9, %c0_10, %c0_11] : memref<1x4x8x32xbf16, #tpu.memory_space<vmem>>, vector<1x4x8x32xbf16>
    %8 = vector.shape_cast %7 : vector<1x4x8x32xbf16> to vector<4x8x32xbf16>
    %c0_12 = arith.constant 0 : index
    %c0_13 = arith.constant 0 : index
    %c0_14 = arith.constant 0 : index
    %9 = vector.load %arg7[%c0_12, %c0_13, %c0_14] : memref<1x1x8xf32, #tpu.memory_space<vmem>>, vector<1x1x8xf32>
    %10 = vector.shape_cast %9 : vector<1x1x8xf32> to vector<1x8xf32>
    "tpu.trace_start"() <{level = 10 : i32, message = "hqd,hkd->hqk"}> : () -> ()
    %cst = arith.constant dense<0.000000e+00> : vector<4x8x8xf32>
    %11 = tpu.matmul %4, %6, %cst {dimension_numbers = #tpu.dot_dimension_numbers<[2], [2], [1], [1], [0, 0, 0, 1, 1, 1], [0], [0]>} : vector<4x8x32xbf16>, vector<4x8x32xbf16>, vector<4x8x8xf32> -> vector<4x8x8xf32>
    "tpu.trace_stop"() : () -> ()
    %12 = vector.shape_cast %10 : vector<1x8xf32> to vector<1x1x8xf32>
    %13 = vector.broadcast %12 : vector<1x1x8xf32> to vector<4x8x8xf32>
    %14 = arith.addf %11, %13 : vector<4x8x8xf32>
    %c0_15 = arith.constant 0 : index
    %c0_16 = arith.constant 0 : index
    %c0_17 = arith.constant 0 : index
    %15 = vector.load %arg21[%c0_15, %c0_16, %c0_17] : memref<4x8x1xf32, #tpu.memory_space<vmem>>, vector<4x8x1xf32>
    %cst_18 = arith.constant dense<0xFF800000> : vector<4x8xf32>
    %16 = vector.multi_reduction <maximumf>, %14, %cst_18 [2] : vector<4x8x8xf32> to vector<4x8xf32>
    %17 = vector.shape_cast %16 : vector<4x8xf32> to vector<4x8x1xf32>
    %18 = arith.maximumf %15, %17 : vector<4x8x1xf32>
    %19 = arith.subf %15, %18 : vector<4x8x1xf32>
    %20 = math.exp %19 : vector<4x8x1xf32>
    %21 = vector.broadcast %18 : vector<4x8x1xf32> to vector<4x8x8xf32>
    %22 = arith.subf %14, %21 : vector<4x8x8xf32>
    %23 = math.exp %22 : vector<4x8x8xf32>
    %c0_19 = arith.constant 0 : index
    %c0_20 = arith.constant 0 : index
    %c0_21 = arith.constant 0 : index
    %24 = vector.load %arg22[%c0_19, %c0_20, %c0_21] : memref<4x8x1xf32, #tpu.memory_space<vmem>>, vector<4x8x1xf32>
    %25 = arith.mulf %20, %24 : vector<4x8x1xf32>
    %cst_22 = arith.constant dense<0.000000e+00> : vector<4x8xf32>
    %26 = vector.multi_reduction <add>, %23, %cst_22 [2] : vector<4x8x8xf32> to vector<4x8xf32>
    %27 = vector.shape_cast %26 : vector<4x8xf32> to vector<4x8x1xf32>
    %28 = arith.addf %25, %27 : vector<4x8x1xf32>
    %c0_23 = arith.constant 0 : index
    %c0_24 = arith.constant 0 : index
    %c0_25 = arith.constant 0 : index
    %29 = vector.load %arg22[%c0_23, %c0_24, %c0_25] : memref<4x8x1xf32, #tpu.memory_space<vmem>>, vector<4x8x1xf32>
    tpu.vector_store %arg22[%c0_23, %c0_24, %c0_25], %28 {strides = array<i32>} : memref<4x8x1xf32, #tpu.memory_space<vmem>>, vector<4x8x1xf32>,
    %c0_26 = arith.constant 0 : index
    %c0_27 = arith.constant 0 : index
    %c0_28 = arith.constant 0 : index
    %30 = vector.load %arg23[%c0_26, %c0_27, %c0_28] : memref<4x8x32xf32, #tpu.memory_space<vmem>>, vector<4x8x32xf32>
    %31 = vector.broadcast %20 : vector<4x8x1xf32> to vector<4x8x32xf32>
    %32 = arith.mulf %31, %30 : vector<4x8x32xf32>
    %33 = arith.truncf %23 : vector<4x8x8xf32> to vector<4x8x8xbf16>
    "tpu.trace_start"() <{level = 10 : i32, message = "hqk,hkd->hqd"}> : () -> ()
    %cst_29 = arith.constant dense<0.000000e+00> : vector<4x8x32xf32>
    %34 = tpu.matmul %33, %8, %cst_29 {dimension_numbers = #tpu.dot_dimension_numbers<[2], [1], [1], [2], [0, 0, 0, 1, 1, 2], [0], [0]>} : vector<4x8x8xbf16>, vector<4x8x32xbf16>, vector<4x8x32xf32> -> vector<4x8x32xf32>
    "tpu.trace_stop"() : () -> ()
    %35 = arith.addf %32, %34 : vector<4x8x32xf32>
    %c0_30 = arith.constant 0 : index
    %c0_31 = arith.constant 0 : index
    %c0_32 = arith.constant 0 : index
    %36 = vector.load %arg23[%c0_30, %c0_31, %c0_32] : memref<4x8x32xf32, #tpu.memory_space<vmem>>, vector<4x8x32xf32>
    tpu.vector_store %arg23[%c0_30, %c0_31, %c0_32], %35 {strides = array<i32>} : memref<4x8x32xf32, #tpu.memory_space<vmem>>, vector<4x8x32xf32>,
    %c0_33 = arith.constant 0 : index
    %c0_34 = arith.constant 0 : index
    %c0_35 = arith.constant 0 : index
    %37 = vector.load %arg21[%c0_33, %c0_34, %c0_35] : memref<4x8x1xf32, #tpu.memory_space<vmem>>, vector<4x8x1xf32>
    tpu.vector_store %arg21[%c0_33, %c0_34, %c0_35], %18 {strides = array<i32>} : memref<4x8x1xf32, #tpu.memory_space<vmem>>, vector<4x8x1xf32>,
    %c0_i32_36 = arith.constant 0 : i32
    %38 = arith.cmpi eq, %arg2, %c0_i32_36 : i32
    %39 = arith.extui %38 : i1 to i32
    %c0_i32_37 = arith.constant 0 : i32
    %40 = arith.cmpi ne, %39, %c0_i32_37 : i32
    scf.if %40 {
      %c0_38 = arith.constant 0 : index
      %c0_39 = arith.constant 0 : index
      %c0_40 = arith.constant 0 : index
      %41 = vector.load %arg3[%c0_38, %c0_39, %c0_40] : memref<1x8x128xf32, #tpu.memory_space<vmem>>, vector<1x8x128xf32>
      %42 = vector.shape_cast %41 : vector<1x8x128xf32> to vector<8x128xf32>
      %cst_41 = arith.constant 0.000000e+00 : f32
      %43 = vector.broadcast %cst_41 : f32 to vector<8x128xf32>
      %c0_42 = arith.constant 0 : index
      %c0_43 = arith.constant 0 : index
      %c0_44 = arith.constant 0 : index
      %44 = vector.load %arg22[%c0_42, %c0_43, %c0_44] : memref<4x8x1xf32, #tpu.memory_space<vmem>>, vector<1x8x1xf32>
      %45 = vector.shape_cast %44 : vector<1x8x1xf32> to vector<8x1xf32>
      %46 = tpu.reciprocal %45 {approx = true} : vector<8x1xf32> -> vector<8x1xf32>
      %c0_45 = arith.constant 0 : index
      %c0_46 = arith.constant 0 : index
      %c0_47 = arith.constant 0 : index
      %47 = vector.load %arg23[%c0_45, %c0_46, %c0_47] : memref<4x8x32xf32, #tpu.memory_space<vmem>>, vector<1x8x32xf32>
      %48 = vector.shape_cast %47 : vector<1x8x32xf32> to vector<8x32xf32>
      %49 = vector.broadcast %46 : vector<8x1xf32> to vector<8x32xf32>
      %50 = arith.mulf %48, %49 : vector<8x32xf32>
      %51 = arith.truncf %50 : vector<8x32xf32> to vector<8x32xbf16>
      %c0_48 = arith.constant 0 : index
      %c0_49 = arith.constant 0 : index
      %c0_50 = arith.constant 0 : index
      %52 = vector.load %arg8[%c0_48, %c0_49, %c0_50] : memref<4x32x128xbf16, #tpu.memory_space<vmem>>, vector<1x32x128xbf16>
      %53 = vector.shape_cast %52 : vector<1x32x128xbf16> to vector<32x128xbf16>
      %cst_51 = arith.constant dense<0.000000e+00> : vector<8x128xf32>
      %54 = tpu.matmul %51, %53, %cst_51 {dimension_numbers = #tpu.dot_dimension_numbers<[1], [0], [0], [1], [0, 0, 1, 1], [], []>} : vector<8x32xbf16>, vector<32x128xbf16>, vector<8x128xf32> -> vector<8x128xf32>
      %55 = arith.addf %43, %54 : vector<8x128xf32>
      %c1 = arith.constant 1 : index
      %c0_52 = arith.constant 0 : index
      %c0_53 = arith.constant 0 : index
      %56 = vector.load %arg22[%c1, %c0_52, %c0_53] : memref<4x8x1xf32, #tpu.memory_space<vmem>>, vector<1x8x1xf32>
      %57 = vector.shape_cast %56 : vector<1x8x1xf32> to vector<8x1xf32>
      %58 = tpu.reciprocal %57 {approx = true} : vector<8x1xf32> -> vector<8x1xf32>
      %c1_54 = arith.constant 1 : index
      %c0_55 = arith.constant 0 : index
      %c0_56 = arith.constant 0 : index
      %59 = vector.load %arg23[%c1_54, %c0_55, %c0_56] : memref<4x8x32xf32, #tpu.memory_space<vmem>>, vector<1x8x32xf32>
      %60 = vector.shape_cast %59 : vector<1x8x32xf32> to vector<8x32xf32>
      %61 = vector.broadcast %58 : vector<8x1xf32> to vector<8x32xf32>
      %62 = arith.mulf %60, %61 : vector<8x32xf32>
      %63 = arith.truncf %62 : vector<8x32xf32> to vector<8x32xbf16>
      %c1_57 = arith.constant 1 : index
      %c0_58 = arith.constant 0 : index
      %c0_59 = arith.constant 0 : index
      %64 = vector.load %arg8[%c1_57, %c0_58, %c0_59] : memref<4x32x128xbf16, #tpu.memory_space<vmem>>, vector<1x32x128xbf16>
      %65 = vector.shape_cast %64 : vector<1x32x128xbf16> to vector<32x128xbf16>
      %cst_60 = arith.constant dense<0.000000e+00> : vector<8x128xf32>
      %66 = tpu.matmul %63, %65, %cst_60 {dimension_numbers = #tpu.dot_dimension_numbers<[1], [0], [0], [1], [0, 0, 1, 1], [], []>} : vector<8x32xbf16>, vector<32x128xbf16>, vector<8x128xf32> -> vector<8x128xf32>
      %67 = arith.addf %55, %66 : vector<8x128xf32>
      %c2 = arith.constant 2 : index
      %c0_61 = arith.constant 0 : index
      %c0_62 = arith.constant 0 : index
      %68 = vector.load %arg22[%c2, %c0_61, %c0_62] : memref<4x8x1xf32, #tpu.memory_space<vmem>>, vector<1x8x1xf32>
      %69 = vector.shape_cast %68 : vector<1x8x1xf32> to vector<8x1xf32>
      %70 = tpu.reciprocal %69 {approx = true} : vector<8x1xf32> -> vector<8x1xf32>
      %c2_63 = arith.constant 2 : index
      %c0_64 = arith.constant 0 : index
      %c0_65 = arith.constant 0 : index
      %71 = vector.load %arg23[%c2_63, %c0_64, %c0_65] : memref<4x8x32xf32, #tpu.memory_space<vmem>>, vector<1x8x32xf32>
      %72 = vector.shape_cast %71 : vector<1x8x32xf32> to vector<8x32xf32>
      %73 = vector.broadcast %70 : vector<8x1xf32> to vector<8x32xf32>
      %74 = arith.mulf %72, %73 : vector<8x32xf32>
      %75 = arith.truncf %74 : vector<8x32xf32> to vector<8x32xbf16>
      %c2_66 = arith.constant 2 : index
      %c0_67 = arith.constant 0 : index
      %c0_68 = arith.constant 0 : index
      %76 = vector.load %arg8[%c2_66, %c0_67, %c0_68] : memref<4x32x128xbf16, #tpu.memory_space<vmem>>, vector<1x32x128xbf16>
      %77 = vector.shape_cast %76 : vector<1x32x128xbf16> to vector<32x128xbf16>
      %cst_69 = arith.constant dense<0.000000e+00> : vector<8x128xf32>
      %78 = tpu.matmul %75, %77, %cst_69 {dimension_numbers = #tpu.dot_dimension_numbers<[1], [0], [0], [1], [0, 0, 1, 1], [], []>} : vector<8x32xbf16>, vector<32x128xbf16>, vector<8x128xf32> -> vector<8x128xf32>
      %79 = arith.addf %67, %78 : vector<8x128xf32>
      %c3 = arith.constant 3 : index
      %c0_70 = arith.constant 0 : index
      %c0_71 = arith.constant 0 : index
      %80 = vector.load %arg22[%c3, %c0_70, %c0_71] : memref<4x8x1xf32, #tpu.memory_space<vmem>>, vector<1x8x1xf32>
      %81 = vector.shape_cast %80 : vector<1x8x1xf32> to vector<8x1xf32>
      %82 = tpu.reciprocal %81 {approx = true} : vector<8x1xf32> -> vector<8x1xf32>
      %c3_72 = arith.constant 3 : index
      %c0_73 = arith.constant 0 : index
      %c0_74 = arith.constant 0 : index
      %83 = vector.load %arg23[%c3_72, %c0_73, %c0_74] : memref<4x8x32xf32, #tpu.memory_space<vmem>>, vector<1x8x32xf32>
      %84 = vector.shape_cast %83 : vector<1x8x32xf32> to vector<8x32xf32>
      %85 = vector.broadcast %82 : vector<8x1xf32> to vector<8x32xf32>
      %86 = arith.mulf %84, %85 : vector<8x32xf32>
      %87 = arith.truncf %86 : vector<8x32xf32> to vector<8x32xbf16>
      %c3_75 = arith.constant 3 : index
      %c0_76 = arith.constant 0 : index
      %c0_77 = arith.constant 0 : index
      %88 = vector.load %arg8[%c3_75, %c0_76, %c0_77] : memref<4x32x128xbf16, #tpu.memory_space<vmem>>, vector<1x32x128xbf16>
      %89 = vector.shape_cast %88 : vector<1x32x128xbf16> to vector<32x128xbf16>
      %cst_78 = arith.constant dense<0.000000e+00> : vector<8x128xf32>
      %90 = tpu.matmul %87, %89, %cst_78 {dimension_numbers = #tpu.dot_dimension_numbers<[1], [0], [0], [1], [0, 0, 1, 1], [], []>} : vector<8x32xbf16>, vector<32x128xbf16>, vector<8x128xf32> -> vector<8x128xf32>
      %91 = arith.addf %79, %90 : vector<8x128xf32>
      %c0_79 = arith.constant 0 : index
      %c0_80 = arith.constant 0 : index
      %92 = vector.load %arg9[%c0_79, %c0_80] : memref<1x128xf32, #tpu.memory_space<vmem>>, vector<1x128xf32>
      %93 = vector.broadcast %92 : vector<1x128xf32> to vector<8x128xf32>
      %94 = arith.addf %91, %93 : vector<8x128xf32>
      %95 = arith.addf %42, %94 : vector<8x128xf32>
      %c0_81 = arith.constant 0 : index
      %c0_82 = arith.constant 0 : index
      %96 = vector.load %arg10[%c0_81, %c0_82] : memref<1x128xf32, #tpu.memory_space<vmem>>, vector<1x128xf32>
      %c0_83 = arith.constant 0 : index
      %c0_84 = arith.constant 0 : index
      %97 = vector.load %arg11[%c0_83, %c0_84] : memref<1x128xf32, #tpu.memory_space<vmem>>, vector<1x128xf32>
      %cst_85 = arith.constant dense<0.000000e+00> : vector<8xf32>
      %98 = vector.multi_reduction <add>, %95, %cst_85 [1] : vector<8x128xf32> to vector<8xf32>
      %99 = vector.shape_cast %98 : vector<8xf32> to vector<8x1xf32>
      %cst_86 = arith.constant 1.280000e+02 : f32
      %100 = vector.broadcast %cst_86 : f32 to vector<8x1xf32>
      %101 = arith.divf %99, %100 : vector<8x1xf32>
      %102 = vector.broadcast %101 : vector<8x1xf32> to vector<8x128xf32>
      %103 = arith.subf %95, %102 : vector<8x128xf32>
      %104 = arith.mulf %103, %103 : vector<8x128xf32>
      %cst_87 = arith.constant dense<0.000000e+00> : vector<8xf32>
      %105 = vector.multi_reduction <add>, %104, %cst_87 [1] : vector<8x128xf32> to vector<8xf32>
      %106 = vector.shape_cast %105 : vector<8xf32> to vector<8x1xf32>
      %cst_88 = arith.constant 1.280000e+02 : f32
      %107 = vector.broadcast %cst_88 : f32 to vector<8x1xf32>
      %108 = arith.divf %106, %107 : vector<8x1xf32>
      %109 = vector.broadcast %101 : vector<8x1xf32> to vector<8x128xf32>
      %110 = arith.subf %95, %109 : vector<8x128xf32>
      %cst_89 = arith.constant 9.99999974E-6 : f32
      %111 = vector.broadcast %cst_89 : f32 to vector<8x1xf32>
      %112 = arith.addf %108, %111 : vector<8x1xf32>
      %113 = math.rsqrt %112 : vector<8x1xf32>
      %114 = vector.broadcast %113 : vector<8x1xf32> to vector<8x128xf32>
      %115 = arith.mulf %110, %114 : vector<8x128xf32>
      %116 = vector.broadcast %96 : vector<1x128xf32> to vector<8x128xf32>
      %117 = arith.mulf %115, %116 : vector<8x128xf32>
      %118 = vector.broadcast %97 : vector<1x128xf32> to vector<8x128xf32>
      %119 = arith.addf %117, %118 : vector<8x128xf32>
      %120 = arith.truncf %119 : vector<8x128xf32> to vector<8x128xbf16>
      %c0_90 = arith.constant 0 : index
      %c0_91 = arith.constant 0 : index
      %121 = vector.load %arg12[%c0_90, %c0_91] : memref<128x128xbf16, #tpu.memory_space<vmem>>, vector<128x128xbf16>
      %cst_92 = arith.constant dense<0.000000e+00> : vector<8x128xf32>
      %122 = tpu.matmul %120, %121, %cst_92 {dimension_numbers = #tpu.dot_dimension_numbers<[1], [0], [0], [1], [0, 0, 1, 1], [], []>} : vector<8x128xbf16>, vector<128x128xbf16>, vector<8x128xf32> -> vector<8x128xf32>
      %c0_93 = arith.constant 0 : index
      %c0_94 = arith.constant 0 : index
      %123 = vector.load %arg13[%c0_93, %c0_94] : memref<1x128xf32, #tpu.memory_space<vmem>>, vector<1x128xf32>
      %124 = vector.broadcast %123 : vector<1x128xf32> to vector<8x128xf32>
      %125 = arith.addf %122, %124 : vector<8x128xf32>
      %cst_95 = arith.constant 0.000000e+00 : f32
      %126 = vector.broadcast %cst_95 : f32 to vector<8x128xf32>
      %127 = arith.maximumf %125, %126 : vector<8x128xf32>
      %128 = arith.truncf %127 : vector<8x128xf32> to vector<8x128xbf16>
      %c0_96 = arith.constant 0 : index
      %c0_97 = arith.constant 0 : index
      %129 = vector.load %arg14[%c0_96, %c0_97] : memref<128x256xbf16, #tpu.memory_space<vmem>>, vector<128x256xbf16>
      %cst_98 = arith.constant dense<0.000000e+00> : vector<8x256xf32>
      %130 = tpu.matmul %128, %129, %cst_98 {dimension_numbers = #tpu.dot_dimension_numbers<[1], [0], [0], [1], [0, 0, 1, 1], [], []>} : vector<8x128xbf16>, vector<128x256xbf16>, vector<8x256xf32> -> vector<8x256xf32>
      %c0_99 = arith.constant 0 : index
      %c0_100 = arith.constant 0 : index
      %131 = vector.load %arg15[%c0_99, %c0_100] : memref<1x256xf32, #tpu.memory_space<vmem>>, vector<1x256xf32>
      %132 = vector.broadcast %131 : vector<1x256xf32> to vector<8x256xf32>
      %133 = arith.addf %130, %132 : vector<8x256xf32>
      %cst_101 = arith.constant 0.000000e+00 : f32
      %134 = vector.broadcast %cst_101 : f32 to vector<8x256xf32>
      %135 = arith.maximumf %133, %134 : vector<8x256xf32>
      %136 = arith.truncf %135 : vector<8x256xf32> to vector<8x256xbf16>
      %c0_102 = arith.constant 0 : index
      %c0_103 = arith.constant 0 : index
      %137 = vector.load %arg16[%c0_102, %c0_103] : memref<256x128xbf16, #tpu.memory_space<vmem>>, vector<256x128xbf16>
      %cst_104 = arith.constant dense<0.000000e+00> : vector<8x128xf32>
      %138 = tpu.matmul %136, %137, %cst_104 {dimension_numbers = #tpu.dot_dimension_numbers<[1], [0], [0], [1], [0, 0, 1, 1], [], []>} : vector<8x256xbf16>, vector<256x128xbf16>, vector<8x128xf32> -> vector<8x128xf32>
      %c0_105 = arith.constant 0 : index
      %c0_106 = arith.constant 0 : index
      %139 = vector.load %arg17[%c0_105, %c0_106] : memref<1x128xf32, #tpu.memory_space<vmem>>, vector<1x128xf32>
      %140 = vector.broadcast %139 : vector<1x128xf32> to vector<8x128xf32>
      %141 = arith.addf %138, %140 : vector<8x128xf32>
      %142 = arith.addf %119, %141 : vector<8x128xf32>
      %c0_107 = arith.constant 0 : index
      %c0_108 = arith.constant 0 : index
      %143 = vector.load %arg18[%c0_107, %c0_108] : memref<1x128xf32, #tpu.memory_space<vmem>>, vector<1x128xf32>
      %c0_109 = arith.constant 0 : index
      %c0_110 = arith.constant 0 : index
      %144 = vector.load %arg19[%c0_109, %c0_110] : memref<1x128xf32, #tpu.memory_space<vmem>>, vector<1x128xf32>
      %cst_111 = arith.constant dense<0.000000e+00> : vector<8xf32>
      %145 = vector.multi_reduction <add>, %142, %cst_111 [1] : vector<8x128xf32> to vector<8xf32>
      %146 = vector.shape_cast %145 : vector<8xf32> to vector<8x1xf32>
      %cst_112 = arith.constant 1.280000e+02 : f32
      %147 = vector.broadcast %cst_112 : f32 to vector<8x1xf32>
      %148 = arith.divf %146, %147 : vector<8x1xf32>
      %149 = vector.broadcast %148 : vector<8x1xf32> to vector<8x128xf32>
      %150 = arith.subf %142, %149 : vector<8x128xf32>
      %151 = arith.mulf %150, %150 : vector<8x128xf32>
      %cst_113 = arith.constant dense<0.000000e+00> : vector<8xf32>
      %152 = vector.multi_reduction <add>, %151, %cst_113 [1] : vector<8x128xf32> to vector<8xf32>
      %153 = vector.shape_cast %152 : vector<8xf32> to vector<8x1xf32>
      %cst_114 = arith.constant 1.280000e+02 : f32
      %154 = vector.broadcast %cst_114 : f32 to vector<8x1xf32>
      %155 = arith.divf %153, %154 : vector<8x1xf32>
      %156 = vector.broadcast %148 : vector<8x1xf32> to vector<8x128xf32>
      %157 = arith.subf %142, %156 : vector<8x128xf32>
      %cst_115 = arith.constant 9.99999974E-6 : f32
      %158 = vector.broadcast %cst_115 : f32 to vector<8x1xf32>
      %159 = arith.addf %155, %158 : vector<8x1xf32>
      %160 = math.rsqrt %159 : vector<8x1xf32>
      %161 = vector.broadcast %160 : vector<8x1xf32> to vector<8x128xf32>
      %162 = arith.mulf %157, %161 : vector<8x128xf32>
      %163 = vector.broadcast %143 : vector<1x128xf32> to vector<8x128xf32>
      %164 = arith.mulf %162, %163 : vector<8x128xf32>
      %165 = vector.broadcast %144 : vector<1x128xf32> to vector<8x128xf32>
      %166 = arith.addf %164, %165 : vector<8x128xf32>
      %c0_116 = arith.constant 0 : index
      %c0_117 = arith.constant 0 : index
      %c0_118 = arith.constant 0 : index
      %167 = vector.load %arg20[%c0_116, %c0_117, %c0_118] : memref<1x8x128xf32, #tpu.memory_space<vmem>>, vector<1x8x128xf32>
      %168 = vector.shape_cast %167 : vector<1x8x128xf32> to vector<8x128xf32>
      %169 = vector.shape_cast %166 : vector<8x128xf32> to vector<1x8x128xf32>
      tpu.vector_store %arg20[%c0_116, %c0_117, %c0_118], %169 {strides = array<i32>} : memref<1x8x128xf32, #tpu.memory_space<vmem>>, vector<1x8x128xf32>,
    } else {
    }
    return
  }
  func.func @transform_0(%arg0: i32, %arg1: i32, %arg2: i32) -> (i32, i32, i32) {
    %c0_i32 = arith.constant 0 : i32
    %c0_i32_0 = arith.constant 0 : i32
    return %arg0, %arg1, %c0_i32 : i32, i32, i32
  }
  func.func @transform_1(%arg0: i32, %arg1: i32, %arg2: i32) -> (i32, i32, i32, i32) {
    %c0_i32 = arith.constant 0 : i32
    %c0_i32_0 = arith.constant 0 : i32
    %c0_i32_1 = arith.constant 0 : i32
    return %arg0, %c0_i32, %arg1, %c0_i32_0 : i32, i32, i32, i32
  }
  func.func @transform_2(%arg0: i32, %arg1: i32, %arg2: i32) -> (i32, i32, i32, i32) {
    %c0_i32 = arith.constant 0 : i32
    %c0_i32_0 = arith.constant 0 : i32
    %c0_i32_1 = arith.constant 0 : i32
    return %arg0, %c0_i32, %arg2, %c0_i32_0 : i32, i32, i32, i32
  }
  func.func @transform_3(%arg0: i32, %arg1: i32, %arg2: i32) -> (i32, i32, i32, i32) {
    %c0_i32 = arith.constant 0 : i32
    %c0_i32_0 = arith.constant 0 : i32
    %c0_i32_1 = arith.constant 0 : i32
    return %arg0, %c0_i32, %arg2, %c0_i32_0 : i32, i32, i32, i32
  }
  func.func @transform_4(%arg0: i32, %arg1: i32, %arg2: i32) -> (i32, i32, i32) {
    %c0_i32 = arith.constant 0 : i32
    %c0_i32_0 = arith.constant 0 : i32
    return %arg0, %c0_i32, %arg2 : i32, i32, i32
  }
  func.func @transform_5(%arg0: i32, %arg1: i32, %arg2: i32) -> (i32, i32, i32) {
    %c0_i32 = arith.constant 0 : i32
    %c0_i32_0 = arith.constant 0 : i32
    %c0_i32_1 = arith.constant 0 : i32
    %c0_i32_2 = arith.constant 0 : i32
    return %c0_i32, %c0_i32_0, %c0_i32_1 : i32, i32, i32
  }
  func.func @transform_6(%arg0: i32, %arg1: i32, %arg2: i32) -> (i32, i32) {
    %c0_i32 = arith.constant 0 : i32
    %c0_i32_0 = arith.constant 0 : i32
    %c0_i32_1 = arith.constant 0 : i32
    return %c0_i32, %c0_i32_0 : i32, i32
  }
  func.func @transform_7(%arg0: i32, %arg1: i32, %arg2: i32) -> (i32, i32) {
    %c0_i32 = arith.constant 0 : i32
    %c0_i32_0 = arith.constant 0 : i32
    %c0_i32_1 = arith.constant 0 : i32
    return %c0_i32, %c0_i32_0 : i32, i32
  }
  func.func @transform_8(%arg0: i32, %arg1: i32, %arg2: i32) -> (i32, i32) {
    %c0_i32 = arith.constant 0 : i32
    %c0_i32_0 = arith.constant 0 : i32
    %c0_i32_1 = arith.constant 0 : i32
    return %c0_i32, %c0_i32_0 : i32, i32
  }
  func.func @transform_9(%arg0: i32, %arg1: i32, %arg2: i32) -> (i32, i32) {
    %c0_i32 = arith.constant 0 : i32
    %c0_i32_0 = arith.constant 0 : i32
    %c0_i32_1 = arith.constant 0 : i32
    return %c0_i32, %c0_i32_0 : i32, i32
  }
  func.func @transform_10(%arg0: i32, %arg1: i32, %arg2: i32) -> (i32, i32) {
    %c0_i32 = arith.constant 0 : i32
    %c0_i32_0 = arith.constant 0 : i32
    %c0_i32_1 = arith.constant 0 : i32
    return %c0_i32, %c0_i32_0 : i32, i32
  }
  func.func @transform_11(%arg0: i32, %arg1: i32, %arg2: i32) -> (i32, i32) {
    %c0_i32 = arith.constant 0 : i32
    %c0_i32_0 = arith.constant 0 : i32
    %c0_i32_1 = arith.constant 0 : i32
    return %c0_i32, %c0_i32_0 : i32, i32
  }
  func.func @transform_12(%arg0: i32, %arg1: i32, %arg2: i32) -> (i32, i32) {
    %c0_i32 = arith.constant 0 : i32
    %c0_i32_0 = arith.constant 0 : i32
    %c0_i32_1 = arith.constant 0 : i32
    return %c0_i32, %c0_i32_0 : i32, i32
  }
  func.func @transform_13(%arg0: i32, %arg1: i32, %arg2: i32) -> (i32, i32) {
    %c0_i32 = arith.constant 0 : i32
    %c0_i32_0 = arith.constant 0 : i32
    %c0_i32_1 = arith.constant 0 : i32
    return %c0_i32, %c0_i32_0 : i32, i32
  }
  func.func @transform_14(%arg0: i32, %arg1: i32, %arg2: i32) -> (i32, i32) {
    %c0_i32 = arith.constant 0 : i32
    %c0_i32_0 = arith.constant 0 : i32
    %c0_i32_1 = arith.constant 0 : i32
    return %c0_i32, %c0_i32_0 : i32, i32
  }
  func.func @transform_15(%arg0: i32, %arg1: i32, %arg2: i32) -> (i32, i32) {
    %c0_i32 = arith.constant 0 : i32
    %c0_i32_0 = arith.constant 0 : i32
    %c0_i32_1 = arith.constant 0 : i32
    return %c0_i32, %c0_i32_0 : i32, i32
  }
  func.func @transform_16(%arg0: i32, %arg1: i32, %arg2: i32) -> (i32, i32) {
    %c0_i32 = arith.constant 0 : i32
    %c0_i32_0 = arith.constant 0 : i32
    %c0_i32_1 = arith.constant 0 : i32
    return %c0_i32, %c0_i32_0 : i32, i32
  }
  func.func @transform_17(%arg0: i32, %arg1: i32, %arg2: i32) -> (i32, i32, i32) {
    %c0_i32 = arith.constant 0 : i32
    %c0_i32_0 = arith.constant 0 : i32
    return %arg0, %arg1, %c0_i32 : i32, i32, i32
  }
}

</mosaic_0001>

<bundles_post_ra>
// kernel: tpu_custom_call.1
= control target key start
LH: loop header
LB: loop body
LE: loop exit
PB: predicated region body
PF: predicated region fallthrough
CT: control target
= control target key end

     0   :  { %s3916_s0 = inlined_call_operand.hbm [shape: f32[2,8,128], index: 0, kind: input, shape index: {}]   ;;  %s3917_s1 = inlined_call_operand.hbm [shape: bf16[2,4,8,32], index: 1, kind: input, shape index: {}]   ;;  %s3918_s2 = inlined_call_operand.hbm [shape: bf16[2,4,8,32], index: 2, kind: input, shape index: {}]   ;;  %s3919_s3 = inlined_call_operand.hbm [shape: bf16[2,4,8,32], index: 3, kind: input, shape index: {}]   ;;  %s3920_s4 = inlined_call_operand.vmem [shape: f32[2,1,8], index: 4, kind: input, shape index: {}]   ;;  %s3921_s5 = inlined_call_operand.hbm [shape: bf16[4,32,128], index: 5, kind: input, shape index: {}]   ;;  %s3922_s6 = inlined_call_operand.vmem [shape: f32[1,128], index: 6, kind: input, shape index: {}]   ;;  %s3923_s7 = inlined_call_operand.vmem [shape: f32[1,128], index: 7, kind: input, shape index: {}]   ;;  %s3924_s8 = inlined_call_operand.vmem [shape: f32[1,128], index: 8, kind: input, shape index: {}]   ;;  %s3925_s9 = inlined_call_operand.hbm [shape: bf16[128,128], index: 9, kind: input, shape index: {}]   ;;  %s3926_s10 = inlined_call_operand.vmem [shape: f32[1,128], index: 10, kind: input, shape index: {}]   ;;  %s3927_s11 = inlined_call_operand.hbm [shape: bf16[128,256], index: 11, kind: input, shape index: {}]   ;;  %s3928_s12 = inlined_call_operand.vmem [shape: f32[1,256], index: 12, kind: input, shape index: {}]   ;;  %s3929_s13 = inlined_call_operand.hbm [shape: bf16[256,128], index: 13, kind: input, shape index: {}]   ;;  %s3930_s14 = inlined_call_operand.vmem [shape: f32[1,128], index: 14, kind: input, shape index: {}]   ;;  %s3931_s15 = inlined_call_operand.vmem [shape: f32[1,128], index: 15, kind: input, shape index: {}]   ;;  %s3932_s16 = inlined_call_operand.vmem [shape: f32[1,128], index: 16, kind: input, shape index: {}]   ;;  %s3933_s17 = inlined_call_operand.hbm [shape: f32[2,8,128], index: 17, kind: output, shape index: {}]  }
   0x1   :  { %3968 = sst [smem:[#allocation38_spill]] %s3916_s0 }
   0x2   :  { %3969 = sst [smem:[#allocation39_spill]] %s3917_s1 }
   0x3   :  { %3970 = sst [smem:[#allocation40_spill]] %s3920_s4 }
   0x4   :  { %3971 = sst [smem:[#allocation41_spill]] %s3921_s5 }
   0x5   :  { %3972 = sst [smem:[#allocation42_spill]] %s3922_s6 }
   0x6   :  { %3973 = sst [smem:[#allocation43_spill]] %s3923_s7 }
   0x7   :  { %3974 = sst [smem:[#allocation44_spill]] %s3924_s8 }
   0x8   :  { %3975 = sst [smem:[#allocation45_spill]] %s3925_s9 }
   0x9   :  { %3976 = sst [smem:[#allocation46_spill]] %s3926_s10 }
   0xa   :  { %3977 = sst [smem:[#allocation47_spill]] %s3928_s12 }
   0xb   :  { %3978 = sst [smem:[#allocation48_spill]] %s3930_s14 }
   0xc   :  { %3979 = sst [smem:[#allocation49_spill]] %s3931_s15 }
   0xd   :  { %3980 = sst [smem:[#allocation50_spill]] %s3932_s16 }
   0xe   :  { %3981 = sst [smem:[#allocation51_spill]] %s3933_s17 }
   0xf   :  { %22 = vsyncpa [#allocation6], 0 }
  0x10   :  { %24 = vsyncpa [#allocation6 + $0x1], 0 }
  0x11   :  { %25 = vsyncpa [#allocation9], 0 }
  0x12   :  { %27 = vsyncpa [#allocation9 + $0x1], 0 }
  0x13   :  { %28 = vsyncpa [#allocation12], 0 }
  0x14   :  { %30 = vsyncpa [#allocation12 + $0x1], 0 }
  0x15   :  { %31 = vsyncpa [#allocation15], 0 }
  0x16   :  { %32 = vsyncpa [#allocation18], 0 }
  0x17   :  { %33 = vsyncpa [#allocation7], 0 }
  0x18   :  { %35 = vsyncpa [#allocation7 + $0x1], 0  ;;  %s3280_s24 = smov 0   ;;  %s3282_s25 = smov 0  }
  0x19   :  { %s3284_s26 = smov 0   ;;  %s3286_s27 = smov 0  }
  0x1a   :  { %s3288_s28 = smov 0   ;;  %s3290_s29 = smov 0  }
  0x1b LB: > { %3982 = sst [smem:[#allocation27_spill]] %s3151_s24  ;;  %s3311_s0 = sadd.s32 4294967295, %s3171_s29   ;;  %s3171_s29 = sphi %s3290_s29, %s41_s29   ;;  %s3167_s28 = sphi %s3288_s28, %s4047_s28   ;;  %s3163_s27 = sphi %s3286_s27, %s4046_s27   ;;  %s3159_s26 = sphi %s3284_s26, %s4044_s26   ;;  %s3155_s25 = sphi %s3282_s25, %s4043_s25   ;;  %s3151_s24 = sphi %s3280_s24, %s4042_s24  }
  0x1c   : > { %3983 = sst [smem:[#allocation28_spill]] %s3155_s25  ;;  %s2363_s30 = sadd.s32 4294967294, %s3171_s29  }
  0x1d   : > { %3984 = sst [smem:[#allocation29_spill]] %s3159_s26  ;;  %p82_p0 = scmp.ne.s32.totalorder %s3155_s25, %s3151_s24 }
  0x1e   : > { %3985 = sst [smem:[#allocation30_spill]] %s3163_s27  ;;  %p3939_p1 = scmp.eq.s32.totalorder %s3311_s0, 0 }
  0x1f   : > { %3986 = sst [smem:[#allocation31_spill]] %s3311_s0  ;;  %p478_p3 = scmp.eq.s32.totalorder %s2363_s30, 1 }
  0x20   : > { %p3320_p4 = por %p3939_p1, %p82_p0  ;;  %p2364_p5 = scmp.ge.s32.totalorder %s3171_s29, 1 }
  0x21   : > { %p3325_p6 = por %p478_p3, %p82_p0  ;;  %p485_p7 = scmp.lt.s32.totalorder %s3171_s29, 3 }
  0x22   : > { %s3987_s18 = scalar_select %p3320_p4, 1, 0 }
  0x23   : > { %s3989_s19 = scalar_select %p3325_p6, 1, 0 }
  0x24   : > { %3988 = sst [smem:[#allocation32_spill]] %s3987_s18  ;;  %p3330_p8 = pnand %p2364_p5, %p485_p7 }
  0x25   : > { %3990 = sst [smem:[#allocation33_spill]] %s3989_s19  ;;  %s3173_s20 = smov [#allocation13]  }
  0x26   : > { %s3991_s1 = scalar_select %p3330_p8, 1, 0 }
  0x27   : > { %s497_s21 = sshll.u32 %s3173_s20, 4  ;;  %p2651_p9 = pneg %p3330_p8  ;;  %s3334_s21 = int_to_ptr.vmem [resolvable:$true] %s497_s21 }
  0x28   : > { %3992 = sst [smem:[#allocation34_spill]] %s3991_s1  ;;  %s3174_s23 = smov [#allocation14]  }
  0x29   : > { %p3341_p11 = pnand %p2651_p9, %p3939_p1  ;;  %s519_s30 = sshll.u32 %s3174_s23, 4  ;;  %s3345_s30 = int_to_ptr.vmem [resolvable:$true] %s519_s30 }
  0x2a   : > { %s3994_s5 = sld [smem:[#allocation41_spill]] }
  0x2b   : > { %s3993_s22 = scalar_select %p3341_p11, 1, 0 }
  0x2c   : > { %p3355_p13 = pneg %p3341_p11 }
  0x2e   : > { %s3995_s15 = scalar_select %p3355_p13, 1, 0 }
  0x30   : > { %s2837_s17 = scalar_lea.hbm %s3994_s5, 1024 }
  0x31   : > { %p2838_p12 = scmp.ne.s32.totalorder %s3994_s5, %s2837_s17  ;;  %p2844_p5 = scmp.lt.u32.totalorder %s2837_s17, %s3994_s5 }
  0x33   : > { %p2840_p0 = pnand %p3355_p13, %p2838_p12 }
  0x35   : > { %p2841_p3 = pneg %p2840_p0 }
  0x37   : > { %p2846_p7 = pnand %p2844_p5, %p2841_p3 }
  0x39   : > { %2849 = shalt.err (!%p2846_p7)
}
  0x3a   : > { %s2850_s16 = scalar_lea.vmem %s3334_s21, 1024  ;;  %p2858_p2 = scmp.lt.s32.totalorder %s3334_s21, %s3334_s21 }
  0x3b   : > { %p2851_p9 = scmp.ne.s32.totalorder %s3334_s21, %s2850_s16  ;;  %p2859_p6 = scmp.lt.s32.totalorder %s2850_s16, %s2850_s16 }
  0x3d   : > { %p2853_p10 = pnand %p2851_p9, %p3355_p13  ;;  %p2860_p12 = por %p2859_p6, %p2858_p2 }
  0x3f   : > { %p2854_p1 = pneg %p2853_p10 }
  0x41   : > { %p2861_p0 = pnand %p2860_p12, %p2854_p1 }
  0x43   : > { %2864 = shalt.err (!%p2861_p0)
}
  0x44   : > { %s3940_s24 = smov 64   ;;  %s3942_s14 = smov 4  }
  0x45   : > { %2654 = dma.hbm_to_vmem [thread:$0]  (!%p3341_p11), %s3994_s5, 1024, %s3334_s21, [#allocation12], %s3940_s24, %s3940_s24, %s3942_s14  }
  0x46   : > { %s3996_s9 = sld [smem:[#allocation45_spill]] }
  0x4c   : > { %s2865_s16 = scalar_lea.hbm %s3996_s9, 1024 }
  0x4d   : > { %p2866_p1 = scmp.ne.s32.totalorder %s3996_s9, %s2865_s16  ;;  %p2872_p10 = scmp.lt.u32.totalorder %s2865_s16, %s3996_s9 }
  0x4f   : > { %p2868_p2 = pnand %p2866_p1, %p3355_p13 }
  0x51   : > { %p2869_p6 = pneg %p2868_p2 }
  0x53   : > { %p2874_p3 = pnand %p2872_p10, %p2869_p6 }
  0x55   : > { %2877 = shalt.err (!%p2874_p3)
}
  0x56   : > { %s2878_s21 = scalar_lea.vmem %s3345_s30, 1024  ;;  %p2886_p12 = scmp.lt.s32.totalorder %s3345_s30, %s3345_s30 }
  0x57   : > { %p2879_p5 = scmp.ne.s32.totalorder %s3345_s30, %s2878_s21  ;;  %p2887_p0 = scmp.lt.s32.totalorder %s2878_s21, %s2878_s21 }
  0x59   : > { %p2881_p7 = pnand %p2879_p5, %p3355_p13  ;;  %p2888_p1 = por %p2887_p0, %p2886_p12 }
  0x5b   : > { %p2882_p9 = pneg %p2881_p7 }
  0x5d   : > { %p2889_p2 = pnand %p2888_p1, %p2882_p9 }
  0x5f   : > { %2892 = shalt.err (!%p2889_p2)
}
  0x60   : > { %2657 = dma.hbm_to_vmem [thread:$0]  (!%p3341_p11), %s3996_s9, 1024, %s3345_s30, [#allocation15], %s3940_s24, %s3940_s24, %s3942_s14  }
  0x61   : > { %s60_s10 = sadd.s32 1, %s3167_s28  ;;  %s69_s12 = sadd.s32 1, %s3159_s26 }
  0x62   : > { %p62_p6 = scmp.ge.s32.totalorder %s60_s10, 2  ;;  %p76_p10 = scmp.ne.s32.totalorder %s3159_s26, %s3155_s25 }
  0x63   : > { %p77_p3 = scmp.eq.s32.totalorder %s3171_s29, 0  ;;  %p2685_p5 = scmp.lt.s32.totalorder %s3171_s29, 2 }
  0x64   : > { %s4049_s10 = smov (%p62_p6, %s60_s10), 0  ;;  %p3998_p9 = scmp.eq.s32.totalorder %s3311_s0, 1 }
  0x65   : > { %3997 = sst [smem:[#allocation35_spill]] %s4049_s10  ;;  %p78_p7 = por %p77_p3, %p76_p10 }
  0x66   : > { %p3415_p12 = por %p3998_p9, %p76_p10  ;;  %s64_s19 = ssub.s32 %s3167_s28, %s4049_s10 }
  0x67   : > { %s3422_s30 = sand.u32 1, %s3159_s26   ;;  %p67_p0 = scmp.eq.s32.totalorder %s64_s19, 0 }
  0x68   : > { %s3999_s17 = scalar_select %p3415_p12, 1, 0 }
  0x69   : > { %p3424_p1 = pnand %p2685_p5, %p78_p7  ;;  %s3950_s23 = sand.u32 1, %s3171_s29  }
  0x6a   : > { %4000 = sst [smem:[#allocation36_spill]] %s3999_s17  ;;  %s3430_s16 = sshll.u32 %s3422_s30, 4 }
  0x6b   : > { %s4001_s20 = scalar_select %p3424_p1, 1, 0 }
  0x6c   : > { %s3433_s21 = scalar_select %p67_p0, %s3159_s26, %s69_s12  }
  0x6d   : > { %s3436_s7 = sshll.u32 %s3167_s28, 8  ;;  %s4003_s14 = sld [smem:[#allocation39_spill]] }
  0x6e   : > { %4002 = sst [smem:[#allocation37_spill]] %s3433_s21  ;;  %s597_s19 = scalar_lea.vmem [#allocation8], %s3430_s16 }
  0x6f   : > { %s605_s9 = sshll.u32 %s597_s19, 4  ;;  %s3449_s10 = scalar_lea.sflag [#allocation9], %s3950_s23  ;;  %s3445_s9 = int_to_ptr.vmem [resolvable:$true] %s605_s9 }
  0x70   : > { %p3455_p6 = pneg %p3424_p1 }
  0x72   : > { %s4004_s21 = scalar_select %p3455_p6, 1, 0 }
  0x73   : > { %s3442_s5 = scalar_lea.hbm %s4003_s14, %s3436_s7  ;;  %s2898_s19 = scalar_lea.hbm %s4003_s14, 512 }
  0x74   : > { %s2893_s12 = scalar_lea.hbm %s3442_s5, 256  ;;  %p2899_p5 = scmp.lt.u32.totalorder %s3442_s5, %s4003_s14 }
  0x75   : > { %p2894_p2 = scmp.ne.s32.totalorder %s3442_s5, %s2893_s12  ;;  %p2900_p7 = scmp.lt.u32.totalorder %s2898_s19, %s2893_s12 }
  0x76   : > { %p2902_p0 = scmp.lt.u32.totalorder %s2893_s12, %s3442_s5 }
  0x77   : > { %p2896_p10 = pnand %p3455_p6, %p2894_p2  ;;  %p2901_p9 = por %p2900_p7, %p2899_p5 }
  0x79   : > { %p2897_p3 = pneg %p2896_p10  ;;  %p2903_p12 = por %p2902_p0, %p2901_p9 }
  0x7b   : > { %p2904_p4 = pnand %p2903_p12, %p2897_p3 }
  0x7d   : > { %2907 = shalt.err (!%p2904_p4)
}
  0x7e   : > { %s2908_s23 = scalar_lea.vmem %s3445_s9, 256  ;;  %s3177_s24 = smov [#allocation8]  }
  0x7f   : > { %p2909_p2 = scmp.ne.s32.totalorder %s3445_s9, %s2908_s23  ;;  %s2913_s8 = sshll.u32 %s3177_s24, 4  ;;  %s2914_s8 = int_to_ptr.vmem [resolvable:$false] %s2913_s8 }
  0x80   : > { %s2915_s26 = scalar_lea.vmem %s2914_s8, 512  ;;  %p2916_p11 = scmp.lt.s32.totalorder %s3445_s9, %s2914_s8 }
  0x81   : > { %p2911_p10 = pnand %p2909_p2, %p3455_p6  ;;  %p2917_p13 = scmp.lt.s32.totalorder %s2915_s26, %s2908_s23 }
  0x83   : > { %p2912_p8 = pneg %p2911_p10  ;;  %p2918_p5 = por %p2917_p13, %p2916_p11 }
  0x85   : > { %p2919_p7 = pnand %p2918_p5, %p2912_p8 }
  0x87   : > { %2922 = shalt.err (!%p2919_p7)
}
  0x88   : > { %s4005_s17 = smov 4   ;;  %s4006_s12 = smov 64  }
  0x89   : > { %2670 = dma.hbm_to_vmem [thread:$0]  (!%p3424_p1), %s3442_s5, 256, %s3445_s9, %s3449_s10, %s4006_s12, %s4006_s12, %s4005_s17  }
  0x8a   : > { %s3178_s19 = smov [#allocation16]   ;;  %s2923_s23 = scalar_lea.hbm %s3927_s11, 2048 }
  0x8b   : > { %s535_s14 = sshll.u32 %s3178_s19, 4  ;;  %p2924_p4 = scmp.ne.s32.totalorder %s3927_s11, %s2923_s23  ;;  %s536_s14 = int_to_ptr.vmem [resolvable:$true] %s535_s14 }
  0x8c   : > { %p4007_p8 = scmp.ne.s32.totalorder %s3995_s15, 0  ;;  %p2930_p12 = scmp.lt.u32.totalorder %s2923_s23, %s3927_s11 }
  0x8e   : > { %p2926_p11 = pnand %p2924_p4, %p4007_p8 }
  0x90   : > { %p2927_p13 = pneg %p2926_p11 }
  0x92   : > { %p2932_p3 = pnand %p2930_p12, %p2927_p13 }
  0x94   : > { %2935 = shalt.err (!%p2932_p3)
}
  0x95   : > { %s2936_s5 = scalar_lea.vmem %s536_s14, 2048  ;;  %p2944_p10 = scmp.lt.s32.totalorder %s536_s14, %s536_s14 }
  0x96   : > { %p2937_p9 = scmp.ne.s32.totalorder %s536_s14, %s2936_s5  ;;  %p2945_p5 = scmp.lt.s32.totalorder %s2936_s5, %s2936_s5 }
  0x98   : > { %p2939_p0 = pnand %p2937_p9, %p4007_p8  ;;  %p2946_p7 = por %p2945_p5, %p2944_p10 }
  0x9a   : > { %p2940_p2 = pneg %p2939_p0 }
  0x9c   : > { %p2947_p1 = pnand %p2946_p7, %p2940_p2 }
  0x9e   : > { %2950 = shalt.err (!%p2947_p1)
}
  0x9f   : > { %s3179_s6 = smov 128   ;;  %s3180_s9 = smov 8  }
  0xa0   : > { %p4008_p4 = scmp.ne.s32.totalorder %s3993_s22, 0  ;;  %s3181_s19 = smov [#allocation17]  }
  0xa1   : > { %s551_s24 = sshll.u32 %s3181_s19, 4  ;;  %s2370_s23 = sshll.u32 %s3422_s30, 3  ;;  %s552_s24 = int_to_ptr.vmem [resolvable:$true] %s551_s24 }
  0xa2   : > { %2660 = dma.hbm_to_vmem [thread:$0]  (!%p4008_p4), %s3927_s11, 2048, %s536_s14, [#allocation15], %s3179_s6, %s3179_s6, %s3180_s9  }
  0xa3   : > { %s2951_s5 = scalar_lea.hbm %s3929_s13, 2048 }
  0xa4   : > { %p2952_p1 = scmp.ne.s32.totalorder %s3929_s13, %s2951_s5  ;;  %p2958_p12 = scmp.lt.u32.totalorder %s2951_s5, %s3929_s13 }
  0xa6   : > { %p2954_p11 = pnand %p2952_p1, %p4007_p8 }
  0xa8   : > { %p2955_p13 = pneg %p2954_p11 }
  0xaa   : > { %p2960_p3 = pnand %p2958_p12, %p2955_p13 }
  0xac   : > { %2963 = shalt.err (!%p2960_p3)
}
  0xad   : > { %s2964_s14 = scalar_lea.vmem %s552_s24, 2048  ;;  %p2972_p10 = scmp.lt.s32.totalorder %s552_s24, %s552_s24 }
  0xae   : > { %p2965_p9 = scmp.ne.s32.totalorder %s552_s24, %s2964_s14  ;;  %p2973_p5 = scmp.lt.s32.totalorder %s2964_s14, %s2964_s14 }
  0xb0   : > { %p2967_p0 = pnand %p2965_p9, %p4007_p8  ;;  %p2974_p7 = por %p2973_p5, %p2972_p10 }
  0xb2   : > { %p2968_p2 = pneg %p2967_p0 }
  0xb4   : > { %p2975_p6 = pnand %p2974_p7, %p2968_p2 }
  0xb6   : > { %2978 = shalt.err (!%p2975_p6)
}
  0xb7   : > { %2663 = dma.hbm_to_vmem [thread:$0]  (!%p4008_p4), %s3929_s13, 2048, %s552_s24, [#allocation18], %s4006_s12, %s4006_s12, %s4005_s17  }
  0xb8   : > { %s2371_s15 = sshll.u32 %s3167_s28, 7  ;;  %s4009_s6 = sld [smem:[#allocation38_spill]] }
  0xb9   : > { %s578_s22 = scalar_lea.vmem [#allocation5], %s2370_s23  ;;  %s575_s27 = scalar_lea.sflag [#allocation6], %s3422_s30 }
  0xba   : > { %s586_s4 = sshll.u32 %s578_s22, 4  ;;  %p4010_p8 = scmp.ne.s32.totalorder %s4004_s21, 0  ;;  %s587_s4 = int_to_ptr.vmem [resolvable:$true] %s586_s4 }
  0xbe   : > { %s3526_s9 = scalar_lea.hbm %s4009_s6, %s2371_s15  ;;  %s2984_s26 = scalar_lea.hbm %s4009_s6, 256 }
  0xbf   : > { %s2979_s19 = scalar_lea.hbm %s3526_s9, 128  ;;  %p2985_p4 = scmp.lt.u32.totalorder %s3526_s9, %s4009_s6 }
  0xc0   : > { %p2980_p6 = scmp.ne.s32.totalorder %s3526_s9, %s2979_s19  ;;  %p2986_p13 = scmp.lt.u32.totalorder %s2984_s26, %s2979_s19 }
  0xc1   : > { %p2988_p3 = scmp.lt.u32.totalorder %s2979_s19, %s3526_s9 }
  0xc2   : > { %p2982_p1 = pnand %p2980_p6, %p4010_p8  ;;  %p2987_p12 = por %p2986_p13, %p2985_p4 }
  0xc4   : > { %p2983_p11 = pneg %p2982_p1  ;;  %p2989_p9 = por %p2988_p3, %p2987_p12 }
  0xc6   : > { %p2990_p0 = pnand %p2989_p9, %p2983_p11 }
  0xc8   : > { %2993 = shalt.err (!%p2990_p0)
}
  0xc9   : > { %s2994_s30 = scalar_lea.vmem %s587_s4, 128  ;;  %s3182_s23 = smov [#allocation5]  }
  0xca   : > { %p2995_p2 = scmp.ne.s32.totalorder %s587_s4, %s2994_s30  ;;  %s2999_s25 = sshll.u32 %s3182_s23, 4  ;;  %s3000_s25 = int_to_ptr.vmem [resolvable:$false] %s2999_s25 }
  0xcb   : > { %s3001_s0 = scalar_lea.vmem %s3000_s25, 256  ;;  %p3002_p7 = scmp.lt.s32.totalorder %s587_s4, %s3000_s25 }
  0xcc   : > { %p2997_p10 = pnand %p2995_p2, %p4010_p8  ;;  %p3003_p6 = scmp.lt.s32.totalorder %s3001_s0, %s2994_s30 }
  0xce   : > { %p2998_p5 = pneg %p2997_p10  ;;  %p3004_p1 = por %p3003_p6, %p3002_p7 }
  0xd0   : > { %p3005_p4 = pnand %p3004_p1, %p2998_p5 }
  0xd2   : > { %3008 = shalt.err (!%p3005_p4)
}
  0xd3   : > { %p4011_p13 = scmp.ne.s32.totalorder %s4001_s20, 0  ;;  %s3550_s1 = scalar_lea.hbm %s3918_s2, %s3436_s7 }
  0xd4   : > { %s619_s22 = scalar_lea.vmem [#allocation10], %s3430_s16  ;;  %s3009_s24 = scalar_lea.hbm %s3550_s1, 256 }
  0xd5   : > { %2667 = dma.hbm_to_vmem [thread:$0]  (!%p4011_p13), %s3526_s9, 128, %s587_s4, %s575_s27  }
  0xd6   : > { %s627_s19 = sshll.u32 %s619_s22, 4  ;;  %p3010_p11 = scmp.ne.s32.totalorder %s3550_s1, %s3009_s24  ;;  %s3553_s19 = int_to_ptr.vmem [resolvable:$true] %s627_s19 }
  0xd7   : > { %s3014_s4 = scalar_lea.hbm %s3918_s2, 512  ;;  %p3015_p9 = scmp.lt.u32.totalorder %s3550_s1, %s3918_s2 }
  0xd8   : > { %p3012_p12 = pnand %p3010_p11, %p4010_p8  ;;  %p3016_p0 = scmp.lt.u32.totalorder %s3014_s4, %s3009_s24 }
  0xd9   : > { %p3018_p10 = scmp.lt.u32.totalorder %s3009_s24, %s3550_s1 }
  0xda   : > { %p3013_p3 = pneg %p3012_p12  ;;  %p3017_p2 = por %p3016_p0, %p3015_p9 }
  0xdc   : > { %p3019_p5 = por %p3018_p10, %p3017_p2 }
  0xde   : > { %p3020_p7 = pnand %p3019_p5, %p3013_p3 }
  0xe0   : > { %3023 = shalt.err (!%p3020_p7)
}
  0xe1   : > { %s3024_s5 = scalar_lea.vmem %s3553_s19, 256  ;;  %s3183_s14 = smov [#allocation10]  }
  0xe2   : > { %p3025_p6 = scmp.ne.s32.totalorder %s3553_s19, %s3024_s5  ;;  %s3029_s30 = sshll.u32 %s3183_s14, 4  ;;  %s3030_s30 = int_to_ptr.vmem [resolvable:$false] %s3029_s30 }
  0xe3   : > { %s3031_s23 = scalar_lea.vmem %s3030_s30, 512  ;;  %p3032_p11 = scmp.lt.s32.totalorder %s3553_s19, %s3030_s30 }
  0xe4   : > { %p3027_p1 = pnand %p3025_p6, %p4010_p8  ;;  %p3033_p12 = scmp.lt.s32.totalorder %s3031_s23, %s3024_s5 }
  0xe6   : > { %p3028_p4 = pneg %p3027_p1  ;;  %p3034_p9 = por %p3033_p12, %p3032_p11 }
  0xe8   : > { %p3035_p0 = pnand %p3034_p9, %p3028_p4 }
  0xea   : > { %3038 = shalt.err (!%p3035_p0)
}
  0xeb   : > { %2673 = dma.hbm_to_vmem [thread:$0]  (!%p4011_p13), %s3550_s1, 256, %s3553_s19, %s3449_s10, %s4006_s12, %s4006_s12, %s4005_s17  }
  0xec   : > { %s3584_s15 = scalar_lea.hbm %s3919_s3, %s3436_s7  ;;  %s641_s18 = scalar_lea.vmem [#allocation11], %s3430_s16 }
  0xed   : > { %s649_s22 = sshll.u32 %s641_s18, 4  ;;  %s4012_s24 = sand.u32 1, %s3171_s29   ;;  %s3587_s22 = int_to_ptr.vmem [resolvable:$true] %s649_s22 }
  0xee   : > { %s3591_s8 = scalar_lea.sflag [#allocation12], %s4012_s24  ;;  %s3039_s9 = scalar_lea.hbm %s3584_s15, 256 }
  0xef   : > { %p3040_p3 = scmp.ne.s32.totalorder %s3584_s15, %s3039_s9  ;;  %s3044_s7 = scalar_lea.hbm %s3919_s3, 512 }
  0xf0   : > { %p3045_p5 = scmp.lt.u32.totalorder %s3584_s15, %s3919_s3  ;;  %p3046_p7 = scmp.lt.u32.totalorder %s3044_s7, %s3039_s9 }
  0xf1   : > { %p3042_p2 = pnand %p3040_p3, %p4010_p8  ;;  %p3048_p1 = scmp.lt.u32.totalorder %s3039_s9, %s3584_s15 }
  0xf2   : > { %p3047_p6 = por %p3046_p7, %p3045_p5 }
  0xf3   : > { %p3043_p10 = pneg %p3042_p2 }
  0xf4   : > { %p3049_p4 = por %p3048_p1, %p3047_p6 }
  0xf6   : > { %p3050_p11 = pnand %p3049_p4, %p3043_p10 }
  0xf8   : > { %3053 = shalt.err (!%p3050_p11)
}
  0xf9   : > { %s3054_s16 = scalar_lea.vmem %s3587_s22, 256  ;;  %s3184_s27 = smov [#allocation11]  }
  0xfa   : > { %p3055_p12 = scmp.ne.s32.totalorder %s3587_s22, %s3054_s16  ;;  %s3059_s26 = sshll.u32 %s3184_s27, 4  ;;  %s3060_s26 = int_to_ptr.vmem [resolvable:$false] %s3059_s26 }
  0xfb   : > { %s3061_s5 = scalar_lea.vmem %s3060_s26, 512  ;;  %p3062_p3 = scmp.lt.s32.totalorder %s3587_s22, %s3060_s26 }
  0xfc   : > { %p3057_p9 = pnand %p3055_p12, %p4010_p8  ;;  %p3063_p2 = scmp.lt.s32.totalorder %s3061_s5, %s3054_s16 }
  0xfe   : > { %p3058_p0 = pneg %p3057_p9  ;;  %p3064_p5 = por %p3063_p2, %p3062_p3 }
 0x100   : > { %p3065_p7 = pnand %p3064_p5, %p3058_p0 }
 0x102   : > { %3068 = shalt.err (!%p3065_p7)
}
 0x103   : > { %2676 = dma.hbm_to_vmem [thread:$0]  (!%p4011_p13), %s3584_s15, 256, %s3587_s22, %s3591_s8, %s4006_s12, %s4006_s12, %s4005_s17  }
 0x104   : > { %s4013_s21 = sld [smem:[#allocation34_spill]] }
 0x10a   : > { %p4014_p8 = scmp.ne.s32.totalorder %s4013_s21, 0 }
 0x10b   : > { %s4015_s14 = sld [smem:[#allocation28_spill]] (!%p4014_p8)  ;;  %s4016_s30 = sld [smem:[#allocation32_spill]] (!%p4014_p8) }
 0x10c   : > { %670 = sbr.rel (%p4014_p8) target bundleno = 2644 (0xa54), region = 88 }
 0x111   : > { %s3621_s23 = sand.u32 (!%p4014_p8), 1, %s4015_s14   ;;  %p4017_p10 = scmp.ne.s32.totalorder (!%p4014_p8), %s4016_s30, 0 }
 0x112   : > { %s2382_s25 = sshll.u32 (!%p4014_p8), %s3621_s23, 3  ;;  %s673_s0 = scalar_lea.sflag (!%p4014_p8), [#allocation6], %s3621_s23 }
 0x113   : > { %s3627_s20 = scalar_lea.vmem [#allocation5], %s2382_s25 }
 0x114   : > { %3122 = dma.done.wait (%p4017_p10), %s673_s0, 128  }
 0x115   : > { %3124 = vsyncadd (%p4017_p10), %s673_s0, 4294967168  ;;  %s4018_s17 = sld [smem:[#allocation31_spill]]  ;;  %s2383_s15 = sshll.u32 %s3621_s23, 4 }
 0x116   : > { %s3635_s22 = scalar_lea.vmem [#allocation8], %s2383_s15 }
 0x11b   : > { %s681_s12 = sand.u32 1, %s4018_s17  }
 0x11c   : > { %s682_s18 = scalar_lea.sflag [#allocation9], %s681_s12 }
 0x11d   : > { %3126 = dma.done.wait (%p4017_p10), %s682_s18, 512  }
 0x11e   : > { %3128 = vsyncadd (%p4017_p10), %s682_s18, 4294966784  ;;  %s3641_s24 = scalar_lea.vmem [#allocation10], %s2383_s15  ;;  %s700_s8 = scalar_lea.sflag [#allocation12], %s681_s12 }
 0x11f   : > { %s3643_s9 = scalar_lea.vmem [#allocation11], %s2383_s15 }
 0x120   : > { %3130 = dma.done.wait (%p4017_p10), %s700_s8, 256  }
 0x121   : > { %3132 = vsyncadd (%p4017_p10), %s700_s8, 4294967040  ;;  %p4019_p13 = scmp.eq.s32.totalorder %s4018_s17, 0 }
 0x123   : > { %3134 = dma.done.wait (%p4019_p13), [#allocation12], 1024   ;;  %p4020_p6 = pmov %p4019_p13 }
 0x125   : > { %3136 = vsyncadd (%p4020_p6), [#allocation12], 4294966272  ;;  %p4021_p1 = pmov %p4020_p6 }
 0x127   : > { %3138 = dma.done.wait (%p4021_p1), [#allocation15], 3072   ;;  %p4022_p4 = pmov %p4021_p1 }
 0x128   : > { %p4023_p11 = pmov %p4021_p1 }
 0x129   : > { %3140 = vsyncadd (%p4022_p4), [#allocation15], 4294964224 }
 0x12a   : > { %3142 = dma.done.wait (%p4023_p11), [#allocation18], 2048   ;;  %p4024_p12 = pmov %p4021_p1 }
 0x12b   : > { %vm811_vm0 = vcmask 261120   ;;  %v3185_v0 = vmov 0.0   ;;  %vm3186_vm1 = vmmov 0   ;;  %v820_v1 = vld [vmem:[%s3641_s24] sm:$0xf]  ;;  %s4025_s10 = sld [smem:[#allocation30_spill]] }
 0x12c   : > { %3144 = vsyncadd (%p4024_p12), [#allocation18], 4294965248  ;;  %2525 = vmatprep.subr.bf16.mxu1 %v3185_v0  ;;  %812 = vst.msk [vmem:[#allocation4] sm:$0xff] %vm811_vm0, %v3185_v0  ;;  %2527 = vmatprep.mubr.msk.bf16.mxu1 %vm3186_vm1, %v3185_v0  ;;  %v821_v2 = vld [vmem:[%s3641_s24 + $0x4] sm:$0xf]  ;;  %v840_v3 = vsel %vm811_vm0, %v820_v1, 0 }
 0x12d   : > { %813 = vst.msk [vmem:[#allocation4 + $0x8] sm:$0xff] %vm811_vm0, %v3185_v0  ;;  %814 = vst.msk [vmem:[#allocation4 + $0x10] sm:$0xff] %vm811_vm0, %v3185_v0  ;;  %2549 = vmatprep.subr.bf16.mxu0 %v3185_v0  ;;  %2551 = vmatprep.mubr.msk.bf16.mxu0 %vm3186_vm1, %v3185_v0  ;;  %v886_v4 = vsel %vm811_vm0, %v821_v2, 0  ;;  %v816_v5 = vld [vmem:[%s3635_s22] sm:$0xf]  ;;  %vm802_vm2 = vcmask 7168  }
 0x12e   : > { %815 = vst.msk [vmem:[#allocation4 + $0x18] sm:$0xff] %vm811_vm0, %v3185_v0  ;;  %2526 = vmatpush3.bf16.xpose.msra.mxu1 %v840_v3  ;;  %v822_v6 = vld [vmem:[%s3641_s24 + $0x8] sm:$0xf]  ;;  %v817_v7 = vld [vmem:[%s3635_s22 + $0x4] sm:$0xf]  ;;  %v3187_v13 = vmov -inf  }
 0x12f   : > { %2531 = vmatprep.subr.bf16.mxu1 %v3185_v0  ;;  %v823_v8 = vld [vmem:[%s3641_s24 + $0xc] sm:$0xf]  ;;  %v932_v9 = vsel %vm811_vm0, %v822_v6, 0  ;;  %v818_v11 = vld [vmem:[%s3635_s22 + $0x8] sm:$0xf]  ;;  %803 = vst.msk [vmem:[#allocation2] sm:$0xff] %vm802_vm2, %v3187_v13 }
 0x130   : > { %v978_v10 = vsel %vm811_vm0, %v823_v8, 0  ;;  %v819_v12 = vld [vmem:[%s3635_s22 + $0xc] sm:$0xf]  ;;  %804 = vst.msk [vmem:[#allocation2 + $0x8] sm:$0xff] %vm802_vm2, %v3187_v13  ;;  %805 = vst.msk [vmem:[#allocation2 + $0x10] sm:$0xff] %vm802_vm2, %v3187_v13  ;;  %s4026_s4 = sld [smem:[#allocation40_spill]] }
 0x131   : > { %806 = vst.msk [vmem:[#allocation2 + $0x18] sm:$0xff] %vm802_vm2, %v3187_v13  ;;  %807 = vst.msk [vmem:[#allocation3] sm:$0xff] %vm802_vm2, %v3185_v0  ;;  %p791_p9 = scmp.lt.s32.totalorder %s4025_s10, 1  ;;  %vm1024_vm3 = vcmask 64512   ;;  %v3188_v33 = vmov 0   ;;  %vm1149_vm4 = vcmask 1043456  }
 0x132   : > { %808 = vst.msk [vmem:[#allocation3 + $0x8] sm:$0xff] %vm802_vm2, %v3185_v0  ;;  %809 = vst.msk [vmem:[#allocation3 + $0x10] sm:$0xff] %vm802_vm2, %v3185_v0  ;;  %2751 = vset.pattern.permute.xlu0 %v3188_v33  ;;  %2752 = vset.pattern.permute.xlu1 %v3188_v33  ;;  %v824_v49 = vld [vmem:[%s3643_s9] sm:$0xf]  ;;  %v825_v55 = vld [vmem:[%s3643_s9 + $0x4] sm:$0xf] }
 0x133   : > { %810 = vst.msk [vmem:[#allocation3 + $0x18] sm:$0xff] %vm802_vm2, %v3185_v0  ;;  %s792_s1 = scalar_select %p791_p9, %s4025_s10, 1  ;;  %v1151_v51 = vsel %vm1149_vm4, %v824_v49, 0  ;;  %v1197_v57 = vsel %vm1149_vm4, %v825_v55, 0  ;;  %v826_v3 = vld [vmem:[%s3643_s9 + $0x8] sm:$0xf] }
 0x134   : > { %2550 = vmatpush3.bf16.msra.mxu0 %v1151_v51  ;;  %v1243_v8 = vsel %vm1149_vm4, %v826_v3, 0  ;;  %v2754_v51 = vld [vmem:[#allocation13 + $0x8] sm:$0xff]   ;;  %v2755_v55 = vld [vmem:[#allocation13 + $0x10] sm:$0xff]   ;;  %s4027_s5 = sld [smem:[#allocation42_spill]]  ;;  %s4028_s30 = sld [smem:[#allocation43_spill]] }
 0x135   : > { %2528 = vmatmul.mubr.msk.bf16.vlgmr.msra.gmra.mrb[0].mxu1 %vm811_vm0, %v816_v5  ;;  %2561 = vmatprep.subr.bf16.mxu0 %v3185_v0  ;;  %s4029_s17 = sld [smem:[#allocation44_spill]]  ;;  %s4030_s18 = sld [smem:[#allocation46_spill]] }
 0x136   : > { %2532 = vmatpush3.bf16.xpose.msra.mxu1 %v886_v4  ;;  %2533 = vmatprep.mubr.msk.bf16.mxu1 %vm3186_vm1, %v3185_v0  ;;  %s796_s16 = scalar_lea.vmem %s4026_s4, %s792_s1  ;;  %v1020_v40 = vld [vmem:[#allocation2] sm:$0xff]  ;;  %s4031_s8 = sld [smem:[#allocation47_spill]] }
 0x137   : > { %2537 = vmatprep.subr.bf16.mxu1 %v3185_v0  ;;  %v2391_v14 = vld [vmem:[%s796_s16] ss:$0 sm:$0xff]  ;;  %v3736_v44 = vld [vmem:[#allocation2 + $0x8] sm:$0xff]  ;;  %v3746_v48 = vld [vmem:[#allocation2 + $0x10] sm:$0xff]  ;;  %s4032_s7 = sld [smem:[#allocation48_spill]]  ;;  %s4033_s19 = sld [smem:[#allocation36_spill]] }
 0x138   : > { %v3759_v54 = vld [vmem:[#allocation2 + $0x18] sm:$0xff]  ;;  %s4034_s27 = sld [smem:[#allocation49_spill]]  ;;  %s4035_s21 = sld [smem:[#allocation50_spill]] }
 0x139   : > { %s2460_s14 = sshll.u32 %s4025_s10, 7  ;;  %s4036_s12 = sld [smem:[#allocation51_spill]] }
 0x13a   : > { %v1088_v49 = vld [vmem:[#allocation3 + $0x18] sm:$0xff] }
 0x13d   : > { %2534 = vmatmul.mubr.msk.bf16.vlgmr.msra.gmra.mrb[4].mxu1 %vm811_vm0, %v817_v7  ;;  %p4037_p3 = scmp.ne.s32.totalorder %s4033_s19, 0 }
 0x13e   : > { %2538 = vmatpush3.bf16.xpose.msra.mxu1 %v932_v9  ;;  %2539 = vmatprep.mubr.msk.bf16.mxu1 %vm3186_vm1, %v3185_v0 }
 0x13f   : > { %2543 = vmatprep.subr.bf16.mxu1 %v3185_v0  ;;  %s3867_s15 = scalar_lea.hbm %s4036_s12, %s2460_s14 }
 0x145   : > { %2540 = vmatmul.mubr.msk.bf16.vlgmr.msra.gmra.mrb[8].mxu1 %vm811_vm0, %v818_v11  ;;  %v827_v11 = vld [vmem:[%s3643_s9 + $0xc] sm:$0xf] }
 0x146   : > { %2544 = vmatpush3.bf16.xpose.msra.mxu1 %v978_v10  ;;  %2545 = vmatprep.mubr.msk.bf16.mxu1 %vm3186_vm1, %v3185_v0 }
 0x147   : > { %2555 = vmatprep.subr.bf16.mxu1 %v3185_v0 }
 0x14d   : > { %2546 = vmatmul.mubr.msk.bf16.vlgmr.msra.gmra.mrb[12].mxu1 %vm811_vm0, %v819_v12 }
 0x14e   : > { %2557 = vmatprep.mubr.msk.bf16.mxu1 %vm3186_vm1, %v3185_v0  ;;  %2556 = vmatpush3.bf16.msra.mxu1 %v1197_v57 }
 0x14f   : > { %2567 = vmatprep.subr.bf16.mxu1 %v3185_v0 }
 0x208   : > { %v876_v15 = vpop.f32.mrb[0].mxu1 }
 0x209   : > { %v3720_v16 = vadd.f32 %v2391_v14, %v876_v15  ;;  %v2529_v17 = vpop.f32.mrb[1].mxu1 }
 0x20a   : > { %v879_v18 = vpop.f32.mrb[2].mxu1  ;;  %v1289_v17 = vsel %vm1149_vm4, %v827_v11, 0 }
 0x20b   : > { %v2530_v19 = vpop.f32.mrb[3].mxu1  ;;  %v1025_v20 = vsel %vm1024_vm3, %v3720_v16, -inf }
 0x20c   : > { %1026 = vmax.xlane.f32.xlu0 %v1025_v20 }
 0x210   : > { %v922_v21 = vpop.f32.mrb[4].mxu1 }
 0x211   : > { %v923_v22 = vadd.f32 %v2391_v14, %v922_v21  ;;  %v2535_v23 = vpop.f32.mrb[5].mxu1 }
 0x212   : > { %v925_v24 = vpop.f32.mrb[6].mxu1 }
 0x213   : > { %v2536_v25 = vpop.f32.mrb[7].mxu1  ;;  %v1028_v26 = vsel %vm1024_vm3, %v923_v22, -inf }
 0x214   : > { %1029 = vmax.xlane.f32.xlu0 %v1028_v26 }
 0x218   : > { %v968_v27 = vpop.f32.mrb[8].mxu1 }
 0x219   : > { %v3725_v28 = vadd.f32 %v2391_v14, %v968_v27  ;;  %v2541_v29 = vpop.f32.mrb[9].mxu1 }
 0x21a   : > { %v971_v30 = vpop.f32.mrb[10].mxu1 }
 0x21b   : > { %v2542_v31 = vpop.f32.mrb[11].mxu1  ;;  %v1031_v32 = vsel %vm1024_vm3, %v3725_v28, -inf }
 0x21c   : > { %1032 = vmax.xlane.f32.xlu1 %v1031_v32 }
 0x220   : > { %v1014_v34 = vpop.f32.mrb[12].mxu1 }
 0x221   : > { %v3731_v35 = vadd.f32 %v2391_v14, %v1014_v34  ;;  %v2547_v36 = vpop.f32.mrb[13].mxu1  ;;  %v2753_v34 = vld [vmem:[#allocation13] sm:$0xff]  }
 0x222   : > { %v1017_v37 = vpop.f32.mrb[14].mxu1 }
 0x223   : > { %v2548_v38 = vpop.f32.mrb[15].mxu1  ;;  %v1034_v39 = vsel %vm1024_vm3, %v3731_v35, -inf }
 0x224   : > { %1035 = vmax.xlane.f32.xlu1 %v1034_v39  ;;  %v1086_v39 = vld [vmem:[#allocation3 + $0x8] sm:$0xff] }
 0x299   : > { %v1027_v41 = vpop.xlane.xlu0 %1026 }
 0x29a   : > { %v1037_v42 = vmax.f32 %v1020_v40, %v1027_v41 }
 0x29c   : > { %v1041_v43 = vsub.f32 %v1020_v40, %v1037_v42  ;;  %1339 = vst.msk [vmem:[#allocation2] sm:$0xff] %vm802_vm2, %v1037_v42  ;;  %1055 = vperm.xlu0 %2751, %v1037_v42  }
 0x29e   : > { %v1045_v13 = vmul.f32 1.442695, %v1041_v43 }
 0x2a1   : > { %v1030_v45 = vpop.xlane.xlu0 %1029 }
 0x2a2   : > { %v3739_v46 = vmax.f32 %v3736_v44, %v1030_v45 }
 0x2a4   : > { %v1042_v47 = vsub.f32 %v3736_v44, %v3739_v46  ;;  %1340 = vst.msk [vmem:[#allocation2 + $0x8] sm:$0xff] %vm802_vm2, %v3739_v46  ;;  %1060 = vperm.xlu1 %2752, %v3739_v46   ;;  %v1087_v44 = vld [vmem:[#allocation3 + $0x10] sm:$0xff] }
 0x2a6   : > { %v1047_v27 = vmul.f32 1.442695, %v1042_v47 }
 0x2a9   : > { %v1033_v50 = vpop.xlane.xlu1 %1032 }
 0x2aa   : > { %v3751_v52 = vmax.f32 %v3746_v48, %v1033_v50 }
 0x2ac   : > { %v1043_v53 = vsub.f32 %v3746_v48, %v3751_v52  ;;  %1341 = vst.msk [vmem:[#allocation2 + $0x10] sm:$0xff] %vm802_vm2, %v3751_v52  ;;  %1065 = vperm.xlu1 %2752, %v3751_v52  }
 0x2b1   : > { %v1036_v56 = vpop.xlane.xlu1 %1035 }
 0x2b2   : > { %v1040_v58 = vmax.f32 %v3759_v54, %v1036_v56 }
 0x2b4   : > { %v1044_v59 = vsub.f32 %v3759_v54, %v1040_v58  ;;  %1342 = vst.msk [vmem:[#allocation2 + $0x18] sm:$0xff] %vm802_vm2, %v1040_v58  ;;  %1070 = vperm.xlu1 %2752, %v1040_v58   ;;  %v2756_v58 = vld [vmem:[#allocation13 + $0x18] sm:$0xff]  }
 0x2b6   : > { %v1051_v29 = vmul.f32 1.442695, %v1044_v59 }
 0x31b   : > { %v1056_v60 = vpop.permute.xlu0 %1055 }
 0x31c   : > { %v1073_v61 = vsub.f32 %v3720_v16, %v1056_v60 }
 0x31e   : > { %v1077_v62 = vmul.f32 1.442695, %v1073_v61 }
 0x320   : > { %2809 = vpow2.f32 %v1077_v62  ;;  %v1114_v62 = vld [vmem:[#allocation4] sm:$0xff] }
 0x323   : > { %v1061_v63 = vpop.permute.xlu1 %1060 }
 0x324   : > { %v1074_v1 = vsub.f32 %v923_v22, %v1061_v63 }
 0x326   : > { %v1079_v2 = vmul.f32 1.442695, %v1074_v1 }
 0x328   : > { %2811 = vpow2.f32 %v1079_v2 }
 0x32a   : > { %v2810_v4 = vpop.eup %2809 }
 0x32b   : > { %v1066_v5 = vpop.permute.xlu1 %1065  ;;  %v1093_v6 = vsel %vm1024_vm3, %v2810_v4, 0.0  ;;  %v1142_v7 = vpack.c.bf16 %v2810_v4, %v2810_v4 }
 0x32c   : > { %v1075_v9 = vsub.f32 %v3725_v28, %v1066_v5  ;;  %1094 = vadd.xlane.f32.xlu0 %v1093_v6  ;;  %v1049_v28 = vmul.f32 1.442695, %v1043_v53 }
 0x32d   : > { %2552 = vmatmul.mubr.msk.bf16.vlgmr.msra.gmra.mrb[0].mxu0 %vm1024_vm3, %v1142_v7  ;;  %v1115_v7 = vld [vmem:[#allocation4 + $0x8] sm:$0xff] }
 0x32e   : > { %v1081_v10 = vmul.f32 1.442695, %v1075_v9  ;;  %2562 = vmatpush3.bf16.msra.mxu0 %v1243_v8  ;;  %2563 = vmatprep.mubr.msk.bf16.mxu0 %vm3186_vm1, %v3185_v0 }
 0x32f   : > { %2573 = vmatprep.subr.bf16.mxu0 %v3185_v0 }
 0x330   : > { %2813 = vpow2.f32 %v1081_v10 }
 0x331   : > { %2815 = vpow2.f32 %v1045_v13 }
 0x332   : > { %v2812_v12 = vpop.eup %2811 }
 0x333   : > { %v1071_v14 = vpop.permute.xlu1 %1070  ;;  %v1096_v15 = vsel %vm1024_vm3, %v2812_v12, 0.0  ;;  %v1143_v16 = vpack.c.bf16 %v2812_v12, %v2812_v12 }
 0x334   : > { %v1076_v18 = vsub.f32 %v3731_v35, %v1071_v14  ;;  %1097 = vadd.xlane.f32.xlu1 %v1096_v15  ;;  %v1085_v35 = vld [vmem:[#allocation3] sm:$0xff]  ;;  %v1116_v15 = vld [vmem:[#allocation4 + $0x10] sm:$0xff] }
 0x335   : > { %2558 = vmatmul.mubr.msk.bf16.vlgmr.msra.gmra.mrb[16].mxu1 %vm1024_vm3, %v1143_v16 }
 0x336   : > { %v1083_v19 = vmul.f32 1.442695, %v1076_v18  ;;  %2568 = vmatpush3.bf16.msra.mxu1 %v1289_v17  ;;  %2569 = vmatprep.mubr.msk.bf16.mxu1 %vm3186_vm1, %v3185_v0 }
 0x337   : > { %2581 = vmatprep.subr.bf16.mxu1 %v3185_v0 }
 0x338   : > { %2817 = vpow2.f32 %v1083_v19 }
 0x339   : > { %2819 = vpow2.f32 %v1047_v27 }
 0x33a   : > { %v2814_v20 = vpop.eup %2813  ;;  %2821 = vpow2.f32 %v1049_v28 }
 0x33b   : > { %v1099_v21 = vsel %vm1024_vm3, %v2814_v20, 0.0  ;;  %v1144_v22 = vpack.c.bf16 %v2814_v20, %v2814_v20  ;;  %v2816_v23 = vpop.eup %2815  ;;  %2823 = vpow2.f32 %v1051_v29 }
 0x33c   : > { %1100 = vadd.xlane.f32.xlu1 %v1099_v21  ;;  %v1089_v36 = vmul.f32 %v2816_v23, %v1085_v35  ;;  %v2759_v35 = vld [vmem:[#allocation13 + $0x30] sm:$0xff]  }
 0x33d   : > { %2564 = vmatmul.mubr.msk.bf16.vlgmr.msra.gmra.mrb[4].mxu0 %vm1024_vm3, %v1144_v22 }
 0x33e   : > { %2577 = vmatprep.mubr.msk.bf16.mxu0 %vm3186_vm1, %v3185_v0  ;;  %2574 = vmatpush3.bf16.msra.mxu0 %v2755_v55 }
 0x33f   : > { %2575 = vmatprep.subr.bf16.mxu0 %v3185_v0 }
 0x342   : > { %v2818_v24 = vpop.eup %2817  ;;  %1120 = vperm.xlu0 %2751, %v2816_v23   ;;  %2576 = vmatpush3.bf16.msra.mxu0 %v2756_v58  ;;  %v1117_v23 = vld [vmem:[#allocation4 + $0x18] sm:$0xff] }
 0x343   : > { %v1102_v25 = vsel %vm1024_vm3, %v2818_v24, 0.0  ;;  %v1145_v26 = vpack.c.bf16 %v2818_v24, %v2818_v24  ;;  %v2820_v30 = vpop.eup %2819  ;;  %2589 = vmatprep.subr.bf16.mxu0 %v3185_v0 }
 0x344   : > { %1103 = vadd.xlane.f32.xlu1 %v1102_v25  ;;  %v2822_v31 = vpop.eup %2821  ;;  %v1090_v40 = vmul.f32 %v2820_v30, %v1086_v39 }
 0x345   : > { %2570 = vmatmul.mubr.msk.bf16.vlgmr.msra.gmra.mrb[20].mxu1 %vm1024_vm3, %v1145_v26  ;;  %v2824_v32 = vpop.eup %2823  ;;  %v1091_v45 = vmul.f32 %v2822_v31, %v1087_v44 }
 0x346   : > { %2585 = vmatprep.mubr.msk.bf16.mxu1 %vm3186_vm1, %v3185_v0  ;;  %2582 = vmatpush3.bf16.msra.mxu1 %v2753_v34  ;;  %v1092_v52 = vmul.f32 %v2824_v32, %v1088_v49 }
 0x347   : > { %2583 = vmatprep.subr.bf16.mxu1 %v3185_v0 }
 0x34a   : > { %2584 = vmatpush3.bf16.msra.mxu1 %v2754_v51 }
 0x34b   : > { %2597 = vmatprep.subr.bf16.mxu1 %v3185_v0 }
 0x355   : > { %1125 = vperm.xlu1 %2752, %v2820_v30  }
 0x359   : > { %1130 = vperm.xlu1 %2752, %v2822_v31  }
 0x35d   : > { %1135 = vperm.xlu1 %2752, %v2824_v32  }
 0x3b9   : > { %v1095_v37 = vpop.xlane.xlu0 %1094 }
 0x3ba   : > { %v1105_v38 = vadd.f32 %v1095_v37, %v1089_v36  ;;  %v2760_v37 = vld [vmem:[#allocation13 + $0x38] sm:$0xff]  }
 0x3bc   : > { %1110 = vst.msk [vmem:[#allocation3] sm:$0xff] %vm802_vm2, %v1105_v38 }
 0x3c1   : > { %v1098_v41 = vpop.xlane.xlu1 %1097  ;;  %v1121_v63 = vpop.permute.xlu0 %1120 }
 0x3c2   : > { %v1106_v42 = vadd.f32 %v1098_v41, %v1090_v40  ;;  %v1138_v1 = vmul.f32 %v1121_v63, %v1114_v62  ;;  %v2757_v41 = vld [vmem:[#allocation13 + $0x20] sm:$0xff]  }
 0x3c3   : > { %v1347_v43 = vld [vmem:[#allocation3] sm:$0xff] }
 0x3c4   : > { %1111 = vst.msk [vmem:[#allocation3 + $0x8] sm:$0xff] %vm802_vm2, %v1106_v42  ;;  %2825 = vrcp.f32 %v1347_v43  ;;  %v2758_v43 = vld [vmem:[#allocation13 + $0x28] sm:$0xff]  }
 0x3c9   : > { %v1101_v46 = vpop.xlane.xlu1 %1100 }
 0x3ca   : > { %v1107_v47 = vadd.f32 %v1101_v46, %v1091_v45 }
 0x3cb   : > { %v1362_v48 = vld [vmem:[#allocation3 + $0x8] sm:$0xff] }
 0x3cc   : > { %1112 = vst.msk [vmem:[#allocation3 + $0x10] sm:$0xff] %vm802_vm2, %v1107_v47  ;;  %2827 = vrcp.f32 %v1362_v48 }
 0x3ce   : > { %v2826_v50 = vpop.eup %2825 }
 0x3cf   : > { %1352 = vperm.xlu0 %2751, %v2826_v50  }
 0x3d1   : > { %v1104_v53 = vpop.xlane.xlu1 %1103 }
 0x3d2   : > { %v1108_v54 = vadd.f32 %v1104_v53, %v1092_v52 }
 0x3d3   : > { %v1489_v56 = vld [vmem:[#allocation3 + $0x10] sm:$0xff] }
 0x3d4   : > { %1113 = vst.msk [vmem:[#allocation3 + $0x18] sm:$0xff] %vm802_vm2, %v1108_v54  ;;  %2829 = vrcp.f32 %v1489_v56 }
 0x3d5   : > { %v1126_v8 = vpop.permute.xlu1 %1125 }
 0x3d6   : > { %v2828_v57 = vpop.eup %2827  ;;  %v1139_v9 = vmul.f32 %v1126_v8, %v1115_v7  ;;  %v1346_v7 = vld [vmem:[%s3627_s20] sm:$0xff] }
 0x3d7   : > { %1368 = vperm.xlu1 %2752, %v2828_v57  }
 0x3d9   : > { %v1131_v16 = vpop.permute.xlu1 %1130 }
 0x3da   : > { %v1140_v17 = vmul.f32 %v1131_v16, %v1116_v15 }
 0x3db   : > { %v1562_v59 = vld [vmem:[#allocation3 + $0x18] sm:$0xff] }
 0x3dc   : > { %2831 = vrcp.f32 %v1562_v59 }
 0x3dd   : > { %v1136_v24 = vpop.permute.xlu1 %1135 }
 0x3de   : > { %v2830_v60 = vpop.eup %2829  ;;  %v1141_v25 = vmul.f32 %v1136_v24, %v1117_v23  ;;  %v2769_v23 = vld [vmem:[#allocation16] ss:$8 sps:$4 sm:$0xff]   ;;  %v2771_v24 = vld [vmem:[#allocation16 + $0x4] ss:$8 sps:$4 sm:$0xff]  }
 0x3df   : > { %1495 = vperm.xlu1 %2752, %v2830_v60  }
 0x3e6   : > { %v2832_v61 = vpop.eup %2831 }
 0x3e7   : > { %1568 = vperm.xlu0 %2751, %v2832_v61  }
 0x400   : > { %v1187_v2 = vpop.f32.mrb[0].mxu0 }
 0x401   : > { %v1331_v3 = vadd.f32 %v1187_v2, %v1138_v1  ;;  %v2553_v4 = vpop.f32.mrb[1].mxu0 }
 0x402   : > { %v1190_v5 = vpop.f32.mrb[2].mxu0 }
 0x403   : > { %1335 = vst.msk [vmem:[#allocation4] sm:$0xff] %vm811_vm0, %v1331_v3  ;;  %v2554_v6 = vpop.f32.mrb[3].mxu0 }
 0x408   : > { %v1233_v10 = vpop.f32.mrb[16].mxu1 }
 0x409   : > { %v1332_v11 = vadd.f32 %v1233_v10, %v1139_v9  ;;  %v2559_v12 = vpop.f32.mrb[17].mxu1 }
 0x40a   : > { %v1236_v13 = vpop.f32.mrb[18].mxu1  ;;  %v1349_v31 = vld [vmem:[#allocation4] sm:$0xff]  ;;  %v2762_v12 = vld [vmem:[#allocation14 + $0x8] sm:$0xff]  }
 0x40b   : > { %1336 = vst.msk [vmem:[#allocation4 + $0x8] sm:$0xff] %vm811_vm0, %v1332_v11  ;;  %v2560_v14 = vpop.f32.mrb[19].mxu1  ;;  %v2761_v11 = vld [vmem:[#allocation14] sm:$0xff]  }
 0x410   : > { %v1279_v18 = vpop.f32.mrb[4].mxu0 }
 0x411   : > { %v1333_v19 = vadd.f32 %v1279_v18, %v1140_v17  ;;  %v2565_v20 = vpop.f32.mrb[5].mxu0  ;;  %v2763_v17 = vld [vmem:[#allocation14 + $0x10] sm:$0xff]   ;;  %v2764_v18 = vld [vmem:[#allocation14 + $0x18] sm:$0xff]  }
 0x412   : > { %v1282_v21 = vpop.f32.mrb[6].mxu0  ;;  %v1365_v38 = vld [vmem:[#allocation4 + $0x8] sm:$0xff]  ;;  %v2766_v20 = vld [vmem:[#allocation14 + $0x28] sm:$0xff]  }
 0x413   : > { %1337 = vst.msk [vmem:[#allocation4 + $0x10] sm:$0xff] %vm811_vm0, %v1333_v19  ;;  %v2566_v22 = vpop.f32.mrb[7].mxu0  ;;  %v2765_v19 = vld [vmem:[#allocation14 + $0x20] sm:$0xff]   ;;  %v2767_v21 = vld [vmem:[#allocation14 + $0x30] sm:$0xff]  }
 0x414   : > { %v2768_v22 = vld [vmem:[#allocation14 + $0x38] sm:$0xff]  }
 0x418   : > { %v1325_v26 = vpop.f32.mrb[20].mxu1 }
 0x419   : > { %v1334_v27 = vadd.f32 %v1325_v26, %v1141_v25  ;;  %v2571_v28 = vpop.f32.mrb[21].mxu1  ;;  %v2774_v25 = vld [vmem:[#allocation16 + $0x14] ss:$8 sps:$4 sm:$0xff]   ;;  %v2772_v26 = vld [vmem:[#allocation16 + $0x10] ss:$8 sps:$4 sm:$0xff]  }
 0x41a   : > { %v1328_v29 = vpop.f32.mrb[22].mxu1  ;;  %v1492_v45 = vld [vmem:[#allocation4 + $0x10] sm:$0xff] }
 0x41b   : > { %1338 = vst.msk [vmem:[#allocation4 + $0x18] sm:$0xff] %vm811_vm0, %v1334_v27  ;;  %v2572_v30 = vpop.f32.mrb[23].mxu1  ;;  %v2777_v27 = vld [vmem:[#allocation16 + $0x24] ss:$8 sps:$4 sm:$0xff]   ;;  %v2775_v28 = vld [vmem:[#allocation16 + $0x20] ss:$8 sps:$4 sm:$0xff]  }
 0x41c   : > { %v2780_v29 = vld [vmem:[#allocation16 + $0x34] ss:$8 sps:$4 sm:$0xff]   ;;  %v2778_v30 = vld [vmem:[#allocation16 + $0x30] ss:$8 sps:$4 sm:$0xff]  }
 0x422   : > { %v1565_v48 = vld [vmem:[#allocation4 + $0x18] sm:$0xff] }
 0x44e   : > { %v1353_v32 = vpop.permute.xlu0 %1352 }
 0x44f   : > { %v1355_v34 = vmul.f32 %v1353_v32, %v1349_v31  ;;  %v2783_v31 = vld [vmem:[#allocation16 + $0x44] ss:$8 sps:$4 sm:$0xff]   ;;  %v2781_v32 = vld [vmem:[#allocation16 + $0x40] ss:$8 sps:$4 sm:$0xff]  }
 0x451   : > { %v1356_v36 = vpack.c.bf16 %v1355_v34, %v1355_v34  ;;  %v2784_v34 = vld [vmem:[#allocation16 + $0x50] ss:$8 sps:$4 sm:$0xff]  }
 0x453   : > { %2586 = vmatmul.mubr.msk.bf16.vlgmr.msra.gmra.mrb[24].mxu1 %vm811_vm0, %v1356_v36  ;;  %v2787_v36 = vld [vmem:[#allocation16 + $0x60] ss:$8 sps:$4 sm:$0xff]  }
 0x454   : > { %2598 = vmatpush3.bf16.msra.mxu1 %v2759_v35  ;;  %2601 = vmatprep.mubr.msk.bf16.mxu1 %vm3186_vm1, %v3185_v0  ;;  %v2789_v35 = vld [vmem:[#allocation16 + $0x64] ss:$8 sps:$4 sm:$0xff]  }
 0x455   : > { %2599 = vmatprep.subr.bf16.mxu1 %v3185_v0 }
 0x456   : > { %v1369_v39 = vpop.permute.xlu1 %1368 }
 0x457   : > { %v1371_v40 = vmul.f32 %v1369_v39, %v1365_v38 }
 0x458   : > { %2600 = vmatpush3.bf16.msra.mxu1 %v2760_v37 }
 0x459   : > { %v1372_v42 = vpack.c.bf16 %v1371_v40, %v1371_v40  ;;  %1893 = vmatprep.subr.bf16.mxu1 %v2771_v24 }
 0x45b   : > { %2578 = vmatmul.mubr.msk.bf16.vlgmr.msra.gmra.mrb[8].mxu0 %vm811_vm0, %v1372_v42 }
 0x45c   : > { %2590 = vmatpush3.bf16.msra.mxu0 %v2757_v41  ;;  %2593 = vmatprep.mubr.msk.bf16.mxu0 %vm3186_vm1, %v3185_v0  ;;  %v2413_v41 = vld [vmem:[%s4028_s30] ss:$0 sm:$0xff]  ;;  %s790_s30 = scalar_lea.vmem [#allocation19], %s2382_s25  ;;  %s3189_s25 = smov [#allocation19]  }
 0x45d   : > { %2591 = vmatprep.subr.bf16.mxu0 %v3185_v0  ;;  %s2157_s0 = sshll.u32 %s790_s30, 4  ;;  %s3073_s10 = sshll.u32 %s3189_s25, 4  ;;  %s3869_s0 = int_to_ptr.vmem [resolvable:$true] %s2157_s0  ;;  %s3074_s10 = int_to_ptr.vmem [resolvable:$false] %s3073_s10 }
 0x45e   : > { %v1496_v44 = vpop.permute.xlu1 %1495  ;;  %s3069_s22 = scalar_lea.vmem %s3869_s0, 128  ;;  %s3075_s24 = scalar_lea.vmem %s3074_s10, 256 }
 0x45f   : > { %v1498_v46 = vmul.f32 %v1496_v44, %v1492_v45  ;;  %p3070_p0 = scmp.ne.s32.totalorder %s3869_s0, %s3069_s22  ;;  %p3076_p7 = scmp.lt.s32.totalorder %s3869_s0, %s3074_s10 }
 0x460   : > { %2592 = vmatpush3.bf16.msra.mxu0 %v2758_v43  ;;  %v2414_v43 = vld [vmem:[%s4029_s17] ss:$0 sm:$0xff]  ;;  %p3077_p8 = scmp.lt.s32.totalorder %s3075_s24, %s3069_s22 }
 0x461   : > { %v1499_v47 = vpack.c.bf16 %v1498_v46, %v1498_v46  ;;  %2605 = vmatprep.subr.bf16.mxu0 %v3185_v0  ;;  %p3071_p2 = pnand %p3070_p0, %p4037_p3 }
 0x462   : > { %p3078_p10 = por %p3077_p8, %p3076_p7 }
 0x463   : > { %2594 = vmatmul.mubr.msk.bf16.vlgmr.msra.gmra.mrb[12].mxu0 %vm811_vm0, %v1499_v47  ;;  %v2792_v47 = vld [vmem:[#allocation16 + $0x74] ss:$8 sps:$4 sm:$0xff]   ;;  %p3072_p5 = pneg %p3071_p2 }
 0x464   : > { %2621 = vmatprep.mubr.msk.bf16.mxu0 %vm3186_vm1, %v3185_v0  ;;  %2606 = vmatpush3.bf16.msra.mxu0 %v2761_v11 }
 0x465   : > { %2607 = vmatprep.subr.bf16.mxu0 %v3185_v0  ;;  %p3079_p13 = pnand %p3078_p10, %p3072_p5 }
 0x466   : > { %v1569_v49 = vpop.permute.xlu0 %1568 }
 0x467   : > { %v1571_v50 = vmul.f32 %v1569_v49, %v1565_v48  ;;  %v2790_v48 = vld [vmem:[#allocation16 + $0x70] ss:$8 sps:$4 sm:$0xff]   ;;  %v2793_v49 = vld [vmem:[#allocation17 + $0x40] sm:$0xff]  }
 0x468   : > { %2608 = vmatpush3.bf16.msra.mxu0 %v2762_v12  ;;  %v1801_v12 = vld [vmem:[%s4031_s8] sm:$0x3] }
 0x469   : > { %v1572_v51 = vpack.c.bf16 %v1571_v50, %v1571_v50  ;;  %2609 = vmatprep.subr.bf16.mxu0 %v3185_v0  ;;  %v2794_v50 = vld [vmem:[#allocation17] sm:$0xff]  }
 0x46b   : > { %2602 = vmatmul.mubr.msk.bf16.vlgmr.msra.gmra.mrb[28].mxu1 %vm811_vm0, %v1572_v51  ;;  %v2795_v51 = vld [vmem:[#allocation17 + $0x48] sm:$0xff]  }
 0x46c   : > { %1925 = vmatprep.mubr.bf16.mxu1 %v3188_v33  ;;  %v2412_v33 = vld [vmem:[%s4027_s5] ss:$0 sm:$0xff]  ;;  %2610 = vmatpush3.bf16.msra.mxu0 %v2763_v17 }
 0x46d   : > { %2611 = vmatprep.subr.bf16.mxu0 %v3185_v0  ;;  %1894 = vmatpush1.bf16.msra.mxu1 %v2769_v23 }
 0x46e   : > { %1895 = vmatprep.subr.bf16.mxu1 %v2774_v25 }
 0x470   : > { %2612 = vmatpush3.bf16.msra.mxu0 %v2764_v18 }
 0x471   : > { %2613 = vmatprep.subr.bf16.mxu0 %v3185_v0  ;;  %1896 = vmatpush1.bf16.msra.mxu1 %v2772_v26 }
 0x472   : > { %1897 = vmatprep.subr.bf16.mxu1 %v2777_v27  ;;  %v2440_v27 = vld [vmem:[%s4032_s7] ss:$0 sm:$0xff] }
 0x474   : > { %2614 = vmatpush3.bf16.msra.mxu0 %v2765_v19 }
 0x475   : > { %2615 = vmatprep.subr.bf16.mxu0 %v3185_v0  ;;  %1898 = vmatpush1.bf16.msra.mxu1 %v2775_v28 }
 0x476   : > { %1899 = vmatprep.subr.bf16.mxu1 %v2780_v29 }
 0x478   : > { %2616 = vmatpush3.bf16.msra.mxu0 %v2766_v20 }
 0x479   : > { %2617 = vmatprep.subr.bf16.mxu0 %v3185_v0  ;;  %1900 = vmatpush1.bf16.msra.mxu1 %v2778_v30 }
 0x47a   : > { %1901 = vmatprep.subr.bf16.mxu1 %v2783_v31 }
 0x47c   : > { %2618 = vmatpush3.bf16.msra.mxu0 %v2767_v21 }
 0x47d   : > { %2619 = vmatprep.subr.bf16.mxu0 %v3185_v0  ;;  %v2786_v0 = vld [vmem:[#allocation16 + $0x54] ss:$8 sps:$4 sm:$0xff]   ;;  %1902 = vmatpush1.bf16.msra.mxu1 %v2781_v32 }
 0x47e   : > { %1903 = vmatprep.subr.bf16.mxu1 %v2786_v0 }
 0x480   : > { %2620 = vmatpush3.bf16.msra.mxu0 %v2768_v22 }
 0x481   : > { %1904 = vmatpush1.bf16.msra.mxu1 %v2784_v34  ;;  %2503 = vmatprep.subr.bf16.mxu0 %v2793_v49 }
 0x482   : > { %1905 = vmatprep.subr.bf16.mxu1 %v2789_v35 }
 0x485   : > { %1906 = vmatpush1.bf16.msra.mxu1 %v2787_v36 }
 0x486   : > { %1907 = vmatprep.subr.bf16.mxu1 %v2792_v47 }
 0x489   : > { %1908 = vmatpush1.bf16.msra.mxu1 %v2790_v48 }
 0x526   : > { %v1482_v52 = vpop.f32.mrb[24].mxu1 }
 0x527   : > { %v2587_v53 = vpop.f32.mrb[25].mxu1 }
 0x528   : > { %v1485_v54 = vpop.f32.mrb[26].mxu1  ;;  %v2797_v53 = vld [vmem:[#allocation17 + $0x50] sm:$0xff]  }
 0x529   : > { %v2588_v55 = vpop.f32.mrb[27].mxu1  ;;  %v2798_v54 = vld [vmem:[#allocation17 + $0x10] sm:$0xff]  }
 0x52a   : > { %v2799_v55 = vld [vmem:[#allocation17 + $0x58] sm:$0xff]  }
 0x52e   : > { %v1427_v56 = vpop.f32.mrb[8].mxu0 }
 0x52f   : > { %v1483_v57 = vadd.f32 %v1482_v52, %v1427_v56  ;;  %v2579_v58 = vpop.f32.mrb[9].mxu0  ;;  %v2796_v52 = vld [vmem:[#allocation17 + $0x8] sm:$0xff]   ;;  %v2800_v56 = vld [vmem:[#allocation17 + $0x18] sm:$0xff]  }
 0x530   : > { %v1430_v59 = vpop.f32.mrb[10].mxu0  ;;  %v2802_v58 = vld [vmem:[#allocation17 + $0x20] sm:$0xff]  }
 0x531   : > { %v2580_v60 = vpop.f32.mrb[11].mxu0  ;;  %v2803_v59 = vld [vmem:[#allocation17 + $0x68] sm:$0xff]  }
 0x532   : > { %v2804_v60 = vld [vmem:[#allocation17 + $0x28] sm:$0xff]  }
 0x536   : > { %v1554_v61 = vpop.f32.mrb[12].mxu0 }
 0x537   : > { %v1560_v62 = vadd.f32 %v1554_v61, %v1483_v57  ;;  %v2595_v63 = vpop.f32.mrb[13].mxu0  ;;  %v2801_v57 = vld [vmem:[#allocation17 + $0x60] sm:$0xff]   ;;  %v2415_v61 = vld [vmem:[%s4030_s18] ss:$0 sm:$0xff]  ;;  %s2143_s18 = scalar_lea.sflag [#allocation7], %s3621_s23 }
 0x538   : > { %v1557_v1 = vpop.f32.mrb[14].mxu0 }
 0x539   : > { %v2596_v2 = vpop.f32.mrb[15].mxu0 }
 0x53e   : > { %v1627_v3 = vpop.f32.mrb[28].mxu1 }
 0x53f   : > { %v1633_v4 = vadd.f32 %v1627_v3, %v1560_v62  ;;  %v2603_v5 = vpop.f32.mrb[29].mxu1 }
 0x540   : > { %v1630_v6 = vpop.f32.mrb[30].mxu1  ;;  %v2805_v5 = vld [vmem:[#allocation17 + $0x70] sm:$0xff]  }
 0x541   : > { %v1641_v8 = vadd.f32 %v2412_v33, %v1633_v4  ;;  %v2604_v9 = vpop.f32.mrb[31].mxu1  ;;  %v2806_v6 = vld [vmem:[#allocation17 + $0x30] sm:$0xff]  }
 0x542   : > { %v1803_v9 = vlaneseq }
 0x543   : > { %v1642_v10 = vadd.f32 %v1641_v8, %v1346_v7  ;;  %v2807_v7 = vld [vmem:[#allocation17 + $0x78] sm:$0xff]  }
 0x544   : > { %v2808_v8 = vld [vmem:[#allocation17 + $0x38] sm:$0xff]  }
 0x545   : > { %1645 = vadd.xlane.f32.xlu1 %v1642_v10 }
 0x5d2   : > { %v1646_v13 = vpop.xlane.xlu1 %1645 }
 0x5d3   : > { %v1648_v14 = vmul.f32 0.0078125, %v1646_v13 }
 0x5d5   : > { %v1649_v15 = vsub.f32 %v1642_v10, %v1648_v14  ;;  %v1804_v10 = vshrl.u32 %v1803_v9, 7 }
 0x5d7   : > { %v1650_v16 = vmul.f32 %v1649_v15, %v1649_v15  ;;  %v1805_v11 = vsub.s32 0, %v1804_v10  ;;  %v1809_v13 = vsub.s32 1, %v1804_v10 }
 0x5d9   : > { %1651 = vadd.xlane.f32.xlu0 %v1650_v16  ;;  %v1806_v14 = vrot.slane %v1801_v12, %v1805_v11 }
 0x666   : > { %v1652_v37 = vpop.xlane.xlu0 %1651 }
 0x667   : > { %v1653_v38 = vmul.f32 0.0078125, %v1652_v37 }
 0x669   : > { %v1654_v39 = vadd.f32 1e-05, %v1653_v38 }
 0x66b   : > { %2833 = vrsqrt.f32 %v1654_v39 }
 0x675   : > { %v2834_v40 = vpop.eup %2833 }
 0x676   : > { %v1656_v42 = vmul.f32 %v2834_v40, %v1649_v15  ;;  %v1810_v15 = vrot.slane %v1801_v12, %v1809_v13 }
 0x678   : > { %v1663_v44 = vmul.f32 %v2413_v41, %v1656_v42  ;;  %v2457_v42 = vld [vmem:[%s4034_s27] ss:$0 sm:$0xff] }
 0x67a   : > { %v3841_v45 = vadd.f32 %v2414_v43, %v1663_v44  ;;  %v2458_v44 = vld [vmem:[%s4035_s21] ss:$0 sm:$0xff] }
 0x67c   : > { %v1671_v46 = vpack.c.bf16 %v3841_v45, %v3841_v45 }
 0x67e   : > { %2622 = vmatmul.mubr.bf16.vlgmr.msra.gmra.mrb[16].mxu0 %v1671_v46 }
 0x67f   : > { %2504 = vmatpush3.bf16.msra.mxu0 %v2794_v50 }
 0x680   : > { %2505 = vmatprep.subr.bf16.mxu0 %v2795_v51 }
 0x683   : > { %2506 = vmatpush3.bf16.msra.mxu0 %v2796_v52 }
 0x684   : > { %2507 = vmatprep.subr.bf16.mxu0 %v2797_v53 }
 0x687   : > { %2508 = vmatpush3.bf16.msra.mxu0 %v2798_v54 }
 0x688   : > { %2509 = vmatprep.subr.bf16.mxu0 %v2799_v55 }
 0x68b   : > { %2510 = vmatpush3.bf16.msra.mxu0 %v2800_v56 }
 0x68c   : > { %2511 = vmatprep.subr.bf16.mxu0 %v2801_v57 }
 0x68f   : > { %2512 = vmatpush3.bf16.msra.mxu0 %v2802_v58 }
 0x690   : > { %2513 = vmatprep.subr.bf16.mxu0 %v2803_v59 }
 0x693   : > { %2514 = vmatpush3.bf16.msra.mxu0 %v2804_v60 }
 0x694   : > { %2515 = vmatprep.subr.bf16.mxu0 %v2805_v5 }
 0x697   : > { %2516 = vmatpush3.bf16.msra.mxu0 %v2806_v6 }
 0x698   : > { %2517 = vmatprep.subr.bf16.mxu0 %v2807_v7 }
 0x69b   : > { %2518 = vmatpush3.bf16.msra.mxu0 %v2808_v8 }
 0x751   : > { %v1777_v62 = vpop.f32.mrb[16].mxu0 }
 0x752   : > { %v1778_v63 = vadd.f32 %v2415_v61, %v1777_v62  ;;  %v2623_v1 = vpop.f32.mrb[17].mxu0 }
 0x753   : > { %v1780_v2 = vpop.f32.mrb[18].mxu0 }
 0x754   : > { %v1783_v3 = vmax.f32 %v1778_v63, 0.0  ;;  %v2624_v33 = vpop.f32.mrb[19].mxu0 }
 0x756   : > { %v1784_v4 = vpack.c.bf16 %v1783_v3, %v1783_v3 }
 0x758   : > { %1926 = vmatmul.mubr.bf16.vlgmr.msra.gmra.mrb[32].mxu1 %v1784_v4 }
 0x82b   : > { %v1927_v16 = vpop.f32.mrb[32].mxu1 }
 0x82c   : > { %v1928_v17 = vadd.f32 %v1927_v16, %v1806_v14  ;;  %v1929_v18 = vpop.f32.mrb[33].mxu1 }
 0x82d   : > { %v1930_v19 = vadd.f32 %v1929_v18, %v1810_v15  ;;  %v1931_v20 = vpop.f32.mrb[34].mxu1 }
 0x82e   : > { %v1934_v21 = vmax.f32 %v1928_v17, 0.0  ;;  %v1932_v22 = vpop.f32.mrb[35].mxu1 }
 0x82f   : > { %v1935_v23 = vmax.f32 %v1930_v19, 0.0 }
 0x830   : > { %v1936_v25 = vpack.c.bf16 %v1934_v21, %v1934_v21 }
 0x831   : > { %v1937_v24 = vpack.c.bf16 %v1935_v23, %v1935_v23 }
 0x833   : > { %2105 = vmatprep.mubr.bf16.mxu0 %v1937_v24 }
 0x834   : > { %2106 = vmatmul.mubr.bf16.vlgmr.msra.gmra.mrb[20].mxu0 %v1936_v25 }
 0x907   : > { %v2519_v26 = vpop.f32.mrb[20].mxu0 }
 0x908   : > { %v2520_v28 = vpop.f32.mrb[21].mxu0 }
 0x909   : > { %v2521_v29 = vadd.f32 %v2520_v28, %v2519_v26  ;;  %v2522_v30 = vpop.f32.mrb[22].mxu0 }
 0x90a   : > { %v2523_v31 = vpop.f32.mrb[23].mxu0 }
 0x90b   : > { %v2108_v32 = vadd.f32 %v2521_v29, %v2440_v27 }
 0x90d   : > { %v2113_v0 = vadd.f32 %v2108_v32, %v3841_v45 }
 0x90f   : > { %2116 = vadd.xlane.f32.xlu0 %v2113_v0 }
 0x99c   : > { %v2117_v34 = vpop.xlane.xlu0 %2116 }
 0x99d   : > { %v2118_v35 = vmul.f32 0.0078125, %v2117_v34 }
 0x99f   : > { %v2119_v36 = vsub.f32 %v2113_v0, %v2118_v35 }
 0x9a1   : > { %v2120_v37 = vmul.f32 %v2119_v36, %v2119_v36 }
 0x9a3   : > { %2121 = vadd.xlane.f32.xlu1 %v2120_v37 }
 0xa30   : > { %v2122_v38 = vpop.xlane.xlu1 %2121 }
 0xa31   : > { %v2123_v39 = vmul.f32 0.0078125, %v2122_v38 }
 0xa33   : > { %v2124_v40 = vadd.f32 1e-05, %v2123_v39 }
 0xa35   : > { %2835 = vrsqrt.f32 %v2124_v40 }
 0xa3f   : > { %v2836_v41 = vpop.eup %2835 }
 0xa40   : > { %v2126_v43 = vmul.f32 %v2836_v41, %v2119_v36 }
 0xa42   : > { %v2133_v45 = vmul.f32 %v2457_v42, %v2126_v43 }
 0xa44   : > { %v2140_v46 = vadd.f32 %v2458_v44, %v2133_v45 }
 0xa46   : > { %2141 = vst [vmem:[%s790_s30] sm:$0xff] %v2140_v46 }
 0xa47   : > { %3082 = shalt.err (!%p3079_p13)
}
 0xa48   : > { %s3083_s23 = scalar_lea.hbm %s3867_s15, 128  ;;  %s3087_s1 = scalar_lea.hbm %s4036_s12, 256 }
 0xa49   : > { %p3084_p6 = scmp.ne.s32.totalorder %s3867_s15, %s3083_s23  ;;  %p3088_p11 = scmp.lt.u32.totalorder %s3867_s15, %s4036_s12 }
 0xa4a   : > { %p3089_p12 = scmp.lt.u32.totalorder %s3087_s1, %s3083_s23  ;;  %p3091_p0 = scmp.lt.u32.totalorder %s3083_s23, %s3867_s15 }
 0xa4b   : > { %p3085_p1 = pnand %p3084_p6, %p4037_p3 }
 0xa4c   : > { %p3090_p9 = por %p3089_p12, %p3088_p11 }
 0xa4d   : > { %p3086_p4 = pneg %p3085_p1 }
 0xa4e   : > { %p3092_p2 = por %p3091_p0, %p3090_p9 }
 0xa50   : > { %p3093_p5 = pnand %p3092_p2, %p3086_p4 }
 0xa52   : > { %3096 = shalt.err (!%p3093_p5)
}
 0xa53   : > { %2649 = dma.vmem_to_hbm [thread:$0]  (%p4037_p3), %s3869_s0, 128, %s3867_s15, %s2143_s18  }
 0xa54 PF: > { %s4038_s16 = sld [smem:[#allocation27_spill]]  ;;  %s4039_s27 = sld [smem:[#allocation33_spill]] }
 0xa55   : > { %p4041_p8 = scmp.ge.s32.totalorder %s3171_s29, 2 }
 0xa5a   : > { %s2169_s26 = sand.u32 1, %s4038_s16   ;;  %p4040_p7 = scmp.ne.s32.totalorder %s4039_s27, 0 }
 0xa5b   : > { %s2170_s5 = scalar_lea.sflag [#allocation7], %s2169_s26 }
 0xa5c   : > { %p2678_p10 = pnand %p4041_p8, %p4040_p7 }
 0xa5e   : > { %3146 = dma.done.wait (!%p2678_p10), %s2170_s5, 128  }
 0xa5f   : > { %3148 = vsyncadd (!%p2678_p10), %s2170_s5, 4294967168  ;;  %s41_s29 = sadd.s32 1, %s3171_s29   ;;  %s4042_s24 = sld [smem:[#allocation28_spill]] }
 0xa60   : > { %p38_p13 = scmp.ge.s32.totalorder %s41_s29, 4   ;;  %s4043_s25 = sld [smem:[#allocation29_spill]] }
 0xa61   : > { %s4044_s26 = sld [smem:[#allocation37_spill]]  ;;  %s4045_s19 = sld [smem:[#allocation35_spill]] }
 0xa62   : > { %s4046_s27 = smov %s3167_s28  ;;  %40 = sbr.rel (!%p38_p13) target bundleno = 27 (0x1b), region = 206 }
 0xa67   : > { %s4047_s28 = smov %s4045_s19 }
 0xa69   :  { %2175 = vsyncpa [#allocation6], 1 }
 0xa6a   :  { %2177 = vsyncpa [#allocation6 + $0x1], 1 }
 0xa6b   :  { %2178 = vsyncpa [#allocation9], 1 }
 0xa6c   :  { %2180 = vsyncpa [#allocation9 + $0x1], 1 }
 0xa6d   :  { %2181 = vsyncpa [#allocation12], 1 }
 0xa6e   :  { %2183 = vsyncpa [#allocation12 + $0x1], 1 }
 0xa6f   :  { %2184 = vsyncpa [#allocation15], 1 }
 0xa70   :  { %2185 = vsyncpa [#allocation18], 1 }
 0xa71   :  { %2186 = vsyncpa [#allocation7], 1 }
 0xa72   :  { %2188 = vsyncpa [#allocation7 + $0x1], 1 }

</bundles_post_ra>
